<compile_context>
chip_gen: v7x
topology: tpu7x:2x2x1
jax: 0.10.0
libtpu: 0.0.40
codegen_flags: <defaults>
</compile_context>

<pallas_src>
from functools import partial

import numpy as np
import jax
import jax.numpy as jnp
from jax import lax
from jax.experimental import pallas as pl
from jax.experimental.pallas import tpu as pltpu

CIN = 4        # conv1 input channels
CH = 16        # conv1/conv2 output channels
F1 = 128       # fc1/fc2 width
OUT_PAD = 128  # lane-dense padded fc3 output width

ARG_ORDER = ("t1", "b1c", "se1", "so1", "t2", "b2c", "sa2", "sb2",
             "w1r", "b1f", "w2f", "b2f", "w3p", "b3p")


# ---------------------------------------------------------------------------
# Fused forward kernel (one batch block per grid step)
# ---------------------------------------------------------------------------
def _make_kernel(nb, S):
    H0, H1, H2 = S, S // 2, S // 4
    NC1 = H1 * CH      # conv1 output lanes per parity
    NC2 = H2 * CH      # conv2 output lanes per parity

    def kernel(x_ref, t1_ref, b1c_ref, se1_ref, so1_ref,
               t2_ref, b2c_ref, sa2_ref, sb2_ref,
               w1r_ref, b1f_ref, w2f_ref, b2f_ref, w3p_ref, b3p_ref, o_ref):
        f32, bf16 = jnp.float32, jnp.bfloat16
        dot = partial(jnp.dot, preferred_element_type=f32)

        def shifted(v, dy, row_mod, period):
            # per-sample row shift by (dy-1) along sublanes with zeroed boundary rows
            if dy == 1:
                return v
            rolled = pltpu.roll(v, shift=(1 - dy) % v.shape[0], axis=0)
            bad = (row_mod == 0) if dy == 0 else (row_mod == period - 1)
            return jnp.where(bad, 0.0, rolled)

        # ---- conv1 (+ width half of pool1): 3 sublane shifts, 256-lane dots ----
        x = x_ref[...]                                       # (nb*H0, H0*CIN) f32
        rm0 = lax.broadcasted_iota(jnp.int32, x.shape, 0) % H0
        acc1 = jnp.zeros((nb * H0, 2 * NC1), f32)
        for dy in range(3):
            xs = shifted(x, dy, rm0, H0).astype(bf16)
            acc1 += dot(xs, t1_ref[dy])                      # even||odd concat
        z1 = jnp.maximum(jnp.maximum(acc1[:, :NC1], acc1[:, NC1:]) + b1c_ref[...], 0.0)

        # ---- height half of pool1 (per-block 0/1 selectors) ----
        z1b = z1.astype(bf16)
        p1 = jnp.maximum(dot(se1_ref[...], z1b), dot(so1_ref[...], z1b))  # (nb*H1, NC1)

        # ---- conv2 (+ width half of pool2): single accumulator, 128-lane dots ----
        rm1 = lax.broadcasted_iota(jnp.int32, p1.shape, 0) % H1
        acc2 = jnp.zeros((nb * H1, 2 * NC2), f32)
        for dy in range(3):
            ps = shifted(p1, dy, rm1, H1).astype(bf16)
            acc2 += dot(ps, t2_ref[dy])
        z2 = jnp.maximum(jnp.maximum(acc2[:, :NC2], acc2[:, NC2:]) + b2c_ref[...], 0.0)

        # ---- height half of pool2 + NCHW flatten: ONE dot per selector ----
        z2b = z2.astype(bf16)
        p2 = jnp.maximum(dot(sa2_ref[...], z2b), dot(sb2_ref[...], z2b))  # (H2*nb, NC2), rows=(h2, nb)

        # ---- fc1 accumulated over h2 row blocks of the pooled slab ----
        acc = jnp.zeros((nb, F1), f32)
        for h2 in range(H2):
            blk = p2[h2 * nb:(h2 + 1) * nb, :].astype(bf16)
            acc += dot(blk, w1r_ref[h2])
        h = jnp.maximum(acc + b1f_ref[...], 0.0)

        # ---- fc2 / fc3 (lane-dense padded output) ----
        h = jnp.maximum(dot(h.astype(bf16), w2f_ref[...]) + b2f_ref[...], 0.0)
        o_ref[...] = dot(h.astype(bf16), w3p_ref[...]) + b3p_ref[...]

    return kernel


def pick_block_batch(batch, input_size):
    # Aim for >=128 rows (one MXU tile of M) per block when the batch allows it.
    target = max(8, 128 // input_size)
    return batch if batch <= target else target


def critic_pallas(prep, x_nchw, nb, out_dim):
    N, S = x_nchw.shape[0], x_nchw.shape[2]
    H0 = S
    grid_n = -(-N // nb)
    n_pad = grid_n * nb

    # NCHW -> rows=(n,h), lanes=(w,c); the only wrapper-side glue op.
    x2d = jnp.transpose(x_nchw, (0, 2, 3, 1)).reshape(N * H0, H0 * CIN)
    if n_pad != N:
        x2d = jnp.pad(x2d, ((0, (n_pad - N) * H0), (0, 0)))

    consts = [prep[k] for k in ARG_ORDER]

    def const_spec(a):
        zero = (0,) * a.ndim
        return pl.BlockSpec(a.shape, lambda b, _z=zero: _z)

    out = pl.pallas_call(
        _make_kernel(nb, S),
        out_shape=jax.ShapeDtypeStruct((n_pad, OUT_PAD), jnp.float32),
        grid=(grid_n,),
        in_specs=[pl.BlockSpec((nb * H0, H0 * CIN), lambda b: (b, 0))]
                 + [const_spec(a) for a in consts],
        out_specs=pl.BlockSpec((nb, OUT_PAD), lambda b: (b, 0)),
        compiler_params=pltpu.CompilerParams(
            dimension_semantics=("parallel",),
            vmem_limit_bytes=32 * 1024 * 1024),
    )(x2d, *consts)
    return out[:N, :out_dim]


# ---------------------------------------------------------------------------
# One-time parameter preparation (folds pad / im2col / width-pool into constants)
# ---------------------------------------------------------------------------
def _toeplitz_cat(wc, w_in):
    # wc: (Cout, Cin, 3, 3) OIHW.  Per dy a (w_in*Cin, 2*wo_n*Cout) block-Toeplitz:
    # columns [0, wo_n*Cout) = even output columns, [wo_n*Cout, ..) = odd.
    cout, cin = wc.shape[0], wc.shape[1]
    wo_n = w_in // 2
    t = np.zeros((3, w_in * cin, 2 * wo_n * cout), np.float32)
    wcn = np.asarray(wc)
    for parity in range(2):
        off = parity * wo_n * cout
        for dy in range(3):
            for wo in range(wo_n):
                for dx in range(3):
                    w = 2 * wo + parity + dx - 1
                    if 0 <= w < w_in:
                        t[dy, w * cin:(w + 1) * cin,
                          off + wo * cout: off + (wo + 1) * cout] = wcn[:, :, dy, dx].T
    return t


def _pool1_row_select(nb, h):
    # even/odd row selectors for 2x down-sampling along h, per batch block.
    ho = h // 2
    se = np.zeros((nb * ho, nb * h), np.float32)
    so = np.zeros((nb * ho, nb * h), np.float32)
    for b in range(nb):
        for r in range(ho):
            se[b * ho + r, b * h + 2 * r] = 1.0
            so[b * ho + r, b * h + 2 * r + 1] = 1.0
    return se, so


def _pool2_row_select(nb, h1, h2n):
    # stacked over h2: output rows ordered (h2, nb).
    a = np.zeros((h2n * nb, nb * h1), np.float32)
    b = np.zeros((h2n * nb, nb * h1), np.float32)
    for h2 in range(h2n):
        for s in range(nb):
            a[h2 * nb + s, s * h1 + 2 * h2] = 1.0
            b[h2 * nb + s, s * h1 + 2 * h2 + 1] = 1.0
    return a, b


def prepare_params(raw, input_size, block_batch):
    assert input_size % 4 == 0
    S, nb = input_size, block_batch
    H1, H2 = S // 2, S // 4
    out_dim = np.asarray(raw["fc3_w"]).shape[0]

    se1, so1 = _pool1_row_select(nb, S)
    sa2, sb2 = _pool2_row_select(nb, H1, H2)

    # fc1 weight pre-permuted to consume the pooled slab (rows=(h2,nb), lanes=(w2,c))
    # while reproducing torch's NCHW flatten order.
    w1 = np.asarray(raw["fc1_w"]).reshape(F1, CH, H2, H2)          # [j, c, h2, w2]
    w1r = np.transpose(w1, (2, 3, 1, 0)).reshape(H2, H2 * CH, F1)

    w3p = np.zeros((F1, OUT_PAD), np.float32)
    w3p[:, :out_dim] = np.asarray(raw["fc3_w"]).T
    b3p = np.zeros((1, OUT_PAD), np.float32)
    b3p[0, :out_dim] = np.asarray(raw["fc3_b"])

    prep = {
        "t1": _toeplitz_cat(np.asarray(raw["conv1_w"]), S),
        "b1c": np.tile(np.asarray(raw["conv1_b"]), H1)[None, :],
        "se1": se1, "so1": so1,
        "t2": _toeplitz_cat(np.asarray(raw["conv2_w"]), H1),
        "b2c": np.tile(np.asarray(raw["conv2_b"]), H2)[None, :],
        "sa2": sa2, "sb2": sb2,
        "w1r": w1r,
        "b1f": np.asarray(raw["fc1_b"])[None, :],
        "w2f": np.asarray(raw["fc2_w"]).T,
        "b2f": np.asarray(raw["fc2_b"])[None, :],
        "w3p": w3p, "b3p": b3p,
    }
    # matmul operands in bf16 (0/1 selectors are exact in bf16), biases in f32
    bf16_keys = {"t1", "se1", "so1", "t2", "sa2", "sb2", "w1r", "w2f", "w3p"}
    return {k: jnp.asarray(v, jnp.bfloat16 if k in bf16_keys else jnp.float32)
            for k, v in prep.items()}


# ---------------------------------------------------------------------------
# Deterministic synthetic parameters in PyTorch layout (shapes from Critic.__init__)
# ---------------------------------------------------------------------------
def init_torch_params(key, input_size, output_size):
    assert input_size % 4 == 0
    ks = jax.random.split(key, 10)
    feat = CH * (input_size // 4) ** 2

    def u(k, shape, fan_in):
        b = 1.0 / np.sqrt(fan_in)
        return jax.random.uniform(k, shape, jnp.float32, -b, b)

    return {
        "conv1_w": u(ks[0], (CH, CIN, 3, 3), CIN * 9),   # OIHW
        "conv1_b": u(ks[1], (CH,), CIN * 9),
        "conv2_w": u(ks[2], (CH, CH, 3, 3), CH * 9),
        "conv2_b": u(ks[3], (CH,), CH * 9),
        "fc1_w": u(ks[4], (F1, feat), feat),             # (out, in) like torch
        "fc1_b": u(ks[5], (F1,), feat),
        "fc2_w": u(ks[6], (F1, F1), F1),
        "fc2_b": u(ks[7], (F1,), F1),
        "fc3_w": u(ks[8], (output_size, F1), F1),
        "fc3_b": u(ks[9], (output_size,), F1),
    }


# Pure-JAX reference of the PyTorch forward (for a numerical self-check).
def critic_reference(raw, x_nchw):
    hp = jax.lax.Precision.HIGHEST
    y = jax.lax.conv_general_dilated(x_nchw, raw["conv1_w"], (1, 1), ((1, 1), (1, 1)),
                                     dimension_numbers=("NCHW", "OIHW", "NCHW"), precision=hp)
    y = jnp.maximum(y + raw["conv1_b"][None, :, None, None], 0.0)
    y = jax.lax.reduce_window(y, -jnp.inf, jax.lax.max, (1, 1, 2, 2), (1, 1, 2, 2), "VALID")
    y = jax.lax.conv_general_dilated(y, raw["conv2_w"], (1, 1), ((1, 1), (1, 1)),
                                     dimension_numbers=("NCHW", "OIHW", "NCHW"), precision=hp)
    y = jnp.maximum(y + raw["conv2_b"][None, :, None, None], 0.0)
    y = jax.lax.reduce_window(y, -jnp.inf, jax.lax.max, (1, 1, 2, 2), (1, 1, 2, 2), "VALID")
    y = y.reshape(x_nchw.shape[0], -1)
    y = jnp.maximum(jnp.dot(y, raw["fc1_w"].T, precision=hp) + raw["fc1_b"], 0.0)
    y = jnp.maximum(jnp.dot(y, raw["fc2_w"].T, precision=hp) + raw["fc2_b"], 0.0)
    return jnp.dot(y, raw["fc3_w"].T, precision=hp) + raw["fc3_b"]


# TODO(synk): optimizer / backpropagate / learning_rate_decay are training-side
# (torch.optim.Adam) and have no forward-pass Pallas equivalent; not implemented.

if __name__ == "__main__":
    key = jax.random.PRNGKey(0)
    kx, kp = jax.random.split(key)

    input_size = 16   # spatial size, divisible by 4 as the module asserts
    output_size = 1   # critic value head
    batch = 2

    raw = init_torch_params(kp, input_size, output_size)
    nb = pick_block_batch(batch, input_size)
    prep = prepare_params(raw, input_size, nb)
    x = jax.random.normal(kx, (batch, CIN, input_size, input_size), jnp.float32)

    fwd = jax.jit(partial(critic_pallas, nb=nb, out_dim=output_size))
    y = jax.block_until_ready(fwd(prep, x))
    assert y.shape == (batch, output_size)
    assert bool(jnp.all(jnp.isfinite(y)))

    # numerical self-check against the pure-JAX reference of the torch forward
    y_ref = critic_reference(raw, x)
    assert bool(jnp.allclose(y, y_ref, rtol=2e-2, atol=2e-2)), (np.asarray(y), np.asarray(y_ref))

    print("KERNEL_OK")
</pallas_src>

<mosaic_0001>
module attributes {stable_mosaic.version = 11 : i64} {
  func.func @kernel(%arg0: i32, %arg1: memref<32x64xf32, #tpu.memory_space<vmem>>, %arg2: memref<3x64x256xbf16, #tpu.memory_space<vmem>>, %arg3: memref<1x128xf32, #tpu.memory_space<vmem>>, %arg4: memref<16x32xbf16, #tpu.memory_space<vmem>>, %arg5: memref<16x32xbf16, #tpu.memory_space<vmem>>, %arg6: memref<3x128x128xbf16, #tpu.memory_space<vmem>>, %arg7: memref<1x64xf32, #tpu.memory_space<vmem>>, %arg8: memref<8x16xbf16, #tpu.memory_space<vmem>>, %arg9: memref<8x16xbf16, #tpu.memory_space<vmem>>, %arg10: memref<4x64x128xbf16, #tpu.memory_space<vmem>>, %arg11: memref<1x128xf32, #tpu.memory_space<vmem>>, %arg12: memref<128x128xbf16, #tpu.memory_space<vmem>>, %arg13: memref<1x128xf32, #tpu.memory_space<vmem>>, %arg14: memref<128x128xbf16, #tpu.memory_space<vmem>>, %arg15: memref<1x128xf32, #tpu.memory_space<vmem>>, %arg16: memref<2x128xf32, #tpu.memory_space<vmem>>) attributes {dimension_semantics = [#tpu.dimension_semantics<parallel>], iteration_bounds = array<i64: 1>, scalar_prefetch = 0 : i64, scratch_operands = 0 : i64, tpu.core_type = #tpu.core_type<tc>, window_params = [{transform_indices = @transform_0, window_bounds = array<i64: 32, 64>}, {pipeline_mode = #tpu.pipeline_mode<synchronous>, transform_indices = @transform_1, window_bounds = array<i64: 3, 64, 256>}, {pipeline_mode = #tpu.pipeline_mode<synchronous>, transform_indices = @transform_2, window_bounds = array<i64: 1, 128>}, {pipeline_mode = #tpu.pipeline_mode<synchronous>, transform_indices = @transform_3, window_bounds = array<i64: 16, 32>}, {pipeline_mode = #tpu.pipeline_mode<synchronous>, transform_indices = @transform_4, window_bounds = array<i64: 16, 32>}, {pipeline_mode = #tpu.pipeline_mode<synchronous>, transform_indices = @transform_5, window_bounds = array<i64: 3, 128, 128>}, {pipeline_mode = #tpu.pipeline_mode<synchronous>, transform_indices = @transform_6, window_bounds = array<i64: 1, 64>}, {pipeline_mode = #tpu.pipeline_mode<synchronous>, transform_indices = @transform_7, window_bounds = array<i64: 8, 16>}, {pipeline_mode = #tpu.pipeline_mode<synchronous>, transform_indices = @transform_8, window_bounds = array<i64: 8, 16>}, {pipeline_mode = #tpu.pipeline_mode<synchronous>, transform_indices = @transform_9, window_bounds = array<i64: 4, 64, 128>}, {pipeline_mode = #tpu.pipeline_mode<synchronous>, transform_indices = @transform_10, window_bounds = array<i64: 1, 128>}, {pipeline_mode = #tpu.pipeline_mode<synchronous>, transform_indices = @transform_11, window_bounds = array<i64: 128, 128>}, {pipeline_mode = #tpu.pipeline_mode<synchronous>, transform_indices = @transform_12, window_bounds = array<i64: 1, 128>}, {pipeline_mode = #tpu.pipeline_mode<synchronous>, transform_indices = @transform_13, window_bounds = array<i64: 128, 128>}, {pipeline_mode = #tpu.pipeline_mode<synchronous>, transform_indices = @transform_14, window_bounds = array<i64: 1, 128>}, {transform_indices = @transform_15, window_bounds = array<i64: 2, 128>}]} {
    %c0 = arith.constant 0 : index
    %c0_0 = arith.constant 0 : index
    %0 = vector.load %arg1[%c0, %c0_0] : memref<32x64xf32, #tpu.memory_space<vmem>>, vector<32x64xf32>
    %1 = tpu.iota {dimensions = array<i32: 0>} : vector<32x64xi32>
    %c16_i32 = arith.constant 16 : i32
    %c0_i32 = arith.constant 0 : i32
    %2 = arith.cmpi eq, %c16_i32, %c0_i32 : i32
    %c1_i32 = arith.constant 1 : i32
    %3 = arith.select %2, %c1_i32, %c16_i32 : i32
    %4 = vector.broadcast %3 : i32 to vector<32x64xi32>
    %5 = arith.remsi %1, %4 : vector<32x64xi32>
    %c0_i32_1 = arith.constant 0 : i32
    %6 = vector.broadcast %c0_i32_1 : i32 to vector<32x64xi32>
    %7 = arith.cmpi ne, %5, %6 : vector<32x64xi32>
    %c0_i32_2 = arith.constant 0 : i32
    %8 = vector.broadcast %c0_i32_2 : i32 to vector<32x64xi32>
    %9 = arith.cmpi slt, %5, %8 : vector<32x64xi32>
    %c0_i32_3 = arith.constant 0 : i32
    %10 = arith.cmpi slt, %3, %c0_i32_3 : i32
    %11 = vector.broadcast %10 : i1 to vector<32x64xi1>
    %12 = vector.broadcast %11 : vector<32x64xi1> to vector<32x64xi1>
    %13 = arith.xori %9, %12 : vector<32x64xi1>
    %14 = arith.andi %13, %7 : vector<32x64xi1>
    %15 = vector.broadcast %3 : i32 to vector<32x64xi32>
    %16 = arith.addi %5, %15 : vector<32x64xi32>
    %17 = arith.select %14, %16, %5 : vector<32x64xi1>, vector<32x64xi32>
    %cst = arith.constant 0.000000e+00 : f32
    %18 = vector.broadcast %cst : f32 to vector<32x256xf32>
    %c1_i32_4 = arith.constant 1 : i32
    %19 = tpu.dynamic_rotate %0 by %c1_i32_4 dim 0 : vector<32x64xf32>, i32 -> vector<32x64xf32>
    %c0_i32_5 = arith.constant 0 : i32
    %20 = vector.broadcast %c0_i32_5 : i32 to vector<32x64xi32>
    %21 = arith.cmpi eq, %17, %20 : vector<32x64xi32>
    %cst_6 = arith.constant 0.000000e+00 : f32
    %22 = vector.broadcast %cst_6 : f32 to vector<32x64xf32>
    %23 = arith.select %21, %22, %19 : vector<32x64xi1>, vector<32x64xf32>
    %24 = arith.truncf %23 : vector<32x64xf32> to vector<32x64xbf16>
    %c0_7 = arith.constant 0 : index
    %c0_8 = arith.constant 0 : index
    %c0_9 = arith.constant 0 : index
    %25 = vector.load %arg2[%c0_7, %c0_8, %c0_9] : memref<3x64x256xbf16, #tpu.memory_space<vmem>>, vector<1x64x256xbf16>
    %26 = vector.shape_cast %25 : vector<1x64x256xbf16> to vector<64x256xbf16>
    %cst_10 = arith.constant dense<0.000000e+00> : vector<32x256xf32>
    %27 = tpu.matmul %24, %26, %cst_10 {dimension_numbers = #tpu.dot_dimension_numbers<[1], [0], [0], [1], [0, 0, 1, 1], [], []>} : vector<32x64xbf16>, vector<64x256xbf16>, vector<32x256xf32> -> vector<32x256xf32>
    %28 = arith.addf %18, %27 : vector<32x256xf32>
    %29 = arith.truncf %0 : vector<32x64xf32> to vector<32x64xbf16>
    %c1 = arith.constant 1 : index
    %c0_11 = arith.constant 0 : index
    %c0_12 = arith.constant 0 : index
    %30 = vector.load %arg2[%c1, %c0_11, %c0_12] : memref<3x64x256xbf16, #tpu.memory_space<vmem>>, vector<1x64x256xbf16>
    %31 = vector.shape_cast %30 : vector<1x64x256xbf16> to vector<64x256xbf16>
    %cst_13 = arith.constant dense<0.000000e+00> : vector<32x256xf32>
    %32 = tpu.matmul %29, %31, %cst_13 {dimension_numbers = #tpu.dot_dimension_numbers<[1], [0], [0], [1], [0, 0, 1, 1], [], []>} : vector<32x64xbf16>, vector<64x256xbf16>, vector<32x256xf32> -> vector<32x256xf32>
    %33 = arith.addf %28, %32 : vector<32x256xf32>
    %c31_i32 = arith.constant 31 : i32
    %34 = tpu.dynamic_rotate %0 by %c31_i32 dim 0 : vector<32x64xf32>, i32 -> vector<32x64xf32>
    %c15_i32 = arith.constant 15 : i32
    %35 = vector.broadcast %c15_i32 : i32 to vector<32x64xi32>
    %36 = arith.cmpi eq, %17, %35 : vector<32x64xi32>
    %cst_14 = arith.constant 0.000000e+00 : f32
    %37 = vector.broadcast %cst_14 : f32 to vector<32x64xf32>
    %38 = arith.select %36, %37, %34 : vector<32x64xi1>, vector<32x64xf32>
    %39 = arith.truncf %38 : vector<32x64xf32> to vector<32x64xbf16>
    %c2 = arith.constant 2 : index
    %c0_15 = arith.constant 0 : index
    %c0_16 = arith.constant 0 : index
    %40 = vector.load %arg2[%c2, %c0_15, %c0_16] : memref<3x64x256xbf16, #tpu.memory_space<vmem>>, vector<1x64x256xbf16>
    %41 = vector.shape_cast %40 : vector<1x64x256xbf16> to vector<64x256xbf16>
    %cst_17 = arith.constant dense<0.000000e+00> : vector<32x256xf32>
    %42 = tpu.matmul %39, %41, %cst_17 {dimension_numbers = #tpu.dot_dimension_numbers<[1], [0], [0], [1], [0, 0, 1, 1], [], []>} : vector<32x64xbf16>, vector<64x256xbf16>, vector<32x256xf32> -> vector<32x256xf32>
    %43 = arith.addf %33, %42 : vector<32x256xf32>
    %44 = vector.extract_strided_slice %43 {offsets = [0, 0], sizes = [32, 128], strides = [1, 1]} : vector<32x256xf32> to vector<32x128xf32>
    %45 = vector.extract_strided_slice %43 {offsets = [0, 128], sizes = [32, 128], strides = [1, 1]} : vector<32x256xf32> to vector<32x128xf32>
    %46 = arith.maximumf %44, %45 : vector<32x128xf32>
    %c0_18 = arith.constant 0 : index
    %c0_19 = arith.constant 0 : index
    %47 = vector.load %arg3[%c0_18, %c0_19] : memref<1x128xf32, #tpu.memory_space<vmem>>, vector<1x128xf32>
    %48 = vector.broadcast %47 : vector<1x128xf32> to vector<32x128xf32>
    %49 = arith.addf %46, %48 : vector<32x128xf32>
    %cst_20 = arith.constant 0.000000e+00 : f32
    %50 = vector.broadcast %cst_20 : f32 to vector<32x128xf32>
    %51 = arith.maximumf %49, %50 : vector<32x128xf32>
    %52 = arith.truncf %51 : vector<32x128xf32> to vector<32x128xbf16>
    %c0_21 = arith.constant 0 : index
    %c0_22 = arith.constant 0 : index
    %53 = vector.load %arg4[%c0_21, %c0_22] : memref<16x32xbf16, #tpu.memory_space<vmem>>, vector<16x32xbf16>
    %cst_23 = arith.constant dense<0.000000e+00> : vector<16x128xf32>
    %54 = tpu.matmul %53, %52, %cst_23 {dimension_numbers = #tpu.dot_dimension_numbers<[1], [0], [0], [1], [0, 0, 1, 1], [], []>} : vector<16x32xbf16>, vector<32x128xbf16>, vector<16x128xf32> -> vector<16x128xf32>
    %c0_24 = arith.constant 0 : index
    %c0_25 = arith.constant 0 : index
    %55 = vector.load %arg5[%c0_24, %c0_25] : memref<16x32xbf16, #tpu.memory_space<vmem>>, vector<16x32xbf16>
    %cst_26 = arith.constant dense<0.000000e+00> : vector<16x128xf32>
    %56 = tpu.matmul %55, %52, %cst_26 {dimension_numbers = #tpu.dot_dimension_numbers<[1], [0], [0], [1], [0, 0, 1, 1], [], []>} : vector<16x32xbf16>, vector<32x128xbf16>, vector<16x128xf32> -> vector<16x128xf32>
    %57 = arith.maximumf %54, %56 : vector<16x128xf32>
    %58 = tpu.iota {dimensions = array<i32: 0>} : vector<16x128xi32>
    %c8_i32 = arith.constant 8 : i32
    %c0_i32_27 = arith.constant 0 : i32
    %59 = arith.cmpi eq, %c8_i32, %c0_i32_27 : i32
    %c1_i32_28 = arith.constant 1 : i32
    %60 = arith.select %59, %c1_i32_28, %c8_i32 : i32
    %61 = vector.broadcast %60 : i32 to vector<16x128xi32>
    %62 = arith.remsi %58, %61 : vector<16x128xi32>
    %c0_i32_29 = arith.constant 0 : i32
    %63 = vector.broadcast %c0_i32_29 : i32 to vector<16x128xi32>
    %64 = arith.cmpi ne, %62, %63 : vector<16x128xi32>
    %c0_i32_30 = arith.constant 0 : i32
    %65 = vector.broadcast %c0_i32_30 : i32 to vector<16x128xi32>
    %66 = arith.cmpi slt, %62, %65 : vector<16x128xi32>
    %c0_i32_31 = arith.constant 0 : i32
    %67 = arith.cmpi slt, %60, %c0_i32_31 : i32
    %68 = vector.broadcast %67 : i1 to vector<16x128xi1>
    %69 = vector.broadcast %68 : vector<16x128xi1> to vector<16x128xi1>
    %70 = arith.xori %66, %69 : vector<16x128xi1>
    %71 = arith.andi %70, %64 : vector<16x128xi1>
    %72 = vector.broadcast %60 : i32 to vector<16x128xi32>
    %73 = arith.addi %62, %72 : vector<16x128xi32>
    %74 = arith.select %71, %73, %62 : vector<16x128xi1>, vector<16x128xi32>
    %cst_32 = arith.constant 0.000000e+00 : f32
    %75 = vector.broadcast %cst_32 : f32 to vector<16x128xf32>
    %c1_i32_33 = arith.constant 1 : i32
    %76 = tpu.dynamic_rotate %57 by %c1_i32_33 dim 0 : vector<16x128xf32>, i32 -> vector<16x128xf32>
    %c0_i32_34 = arith.constant 0 : i32
    %77 = vector.broadcast %c0_i32_34 : i32 to vector<16x128xi32>
    %78 = arith.cmpi eq, %74, %77 : vector<16x128xi32>
    %cst_35 = arith.constant 0.000000e+00 : f32
    %79 = vector.broadcast %cst_35 : f32 to vector<16x128xf32>
    %80 = arith.select %78, %79, %76 : vector<16x128xi1>, vector<16x128xf32>
    %81 = arith.truncf %80 : vector<16x128xf32> to vector<16x128xbf16>
    %c0_36 = arith.constant 0 : index
    %c0_37 = arith.constant 0 : index
    %c0_38 = arith.constant 0 : index
    %82 = vector.load %arg6[%c0_36, %c0_37, %c0_38] : memref<3x128x128xbf16, #tpu.memory_space<vmem>>, vector<1x128x128xbf16>
    %83 = vector.shape_cast %82 : vector<1x128x128xbf16> to vector<128x128xbf16>
    %cst_39 = arith.constant dense<0.000000e+00> : vector<16x128xf32>
    %84 = tpu.matmul %81, %83, %cst_39 {dimension_numbers = #tpu.dot_dimension_numbers<[1], [0], [0], [1], [0, 0, 1, 1], [], []>} : vector<16x128xbf16>, vector<128x128xbf16>, vector<16x128xf32> -> vector<16x128xf32>
    %85 = arith.addf %75, %84 : vector<16x128xf32>
    %86 = arith.truncf %57 : vector<16x128xf32> to vector<16x128xbf16>
    %c1_40 = arith.constant 1 : index
    %c0_41 = arith.constant 0 : index
    %c0_42 = arith.constant 0 : index
    %87 = vector.load %arg6[%c1_40, %c0_41, %c0_42] : memref<3x128x128xbf16, #tpu.memory_space<vmem>>, vector<1x128x128xbf16>
    %88 = vector.shape_cast %87 : vector<1x128x128xbf16> to vector<128x128xbf16>
    %cst_43 = arith.constant dense<0.000000e+00> : vector<16x128xf32>
    %89 = tpu.matmul %86, %88, %cst_43 {dimension_numbers = #tpu.dot_dimension_numbers<[1], [0], [0], [1], [0, 0, 1, 1], [], []>} : vector<16x128xbf16>, vector<128x128xbf16>, vector<16x128xf32> -> vector<16x128xf32>
    %90 = arith.addf %85, %89 : vector<16x128xf32>
    %c15_i32_44 = arith.constant 15 : i32
    %91 = tpu.dynamic_rotate %57 by %c15_i32_44 dim 0 : vector<16x128xf32>, i32 -> vector<16x128xf32>
    %c7_i32 = arith.constant 7 : i32
    %92 = vector.broadcast %c7_i32 : i32 to vector<16x128xi32>
    %93 = arith.cmpi eq, %74, %92 : vector<16x128xi32>
    %cst_45 = arith.constant 0.000000e+00 : f32
    %94 = vector.broadcast %cst_45 : f32 to vector<16x128xf32>
    %95 = arith.select %93, %94, %91 : vector<16x128xi1>, vector<16x128xf32>
    %96 = arith.truncf %95 : vector<16x128xf32> to vector<16x128xbf16>
    %c2_46 = arith.constant 2 : index
    %c0_47 = arith.constant 0 : index
    %c0_48 = arith.constant 0 : index
    %97 = vector.load %arg6[%c2_46, %c0_47, %c0_48] : memref<3x128x128xbf16, #tpu.memory_space<vmem>>, vector<1x128x128xbf16>
    %98 = vector.shape_cast %97 : vector<1x128x128xbf16> to vector<128x128xbf16>
    %cst_49 = arith.constant dense<0.000000e+00> : vector<16x128xf32>
    %99 = tpu.matmul %96, %98, %cst_49 {dimension_numbers = #tpu.dot_dimension_numbers<[1], [0], [0], [1], [0, 0, 1, 1], [], []>} : vector<16x128xbf16>, vector<128x128xbf16>, vector<16x128xf32> -> vector<16x128xf32>
    %100 = arith.addf %90, %99 : vector<16x128xf32>
    %101 = vector.extract_strided_slice %100 {offsets = [0, 0], sizes = [16, 64], strides = [1, 1]} : vector<16x128xf32> to vector<16x64xf32>
    %102 = vector.extract_strided_slice %100 {offsets = [0, 64], sizes = [16, 64], strides = [1, 1]} : vector<16x128xf32> to vector<16x64xf32>
    %103 = arith.maximumf %101, %102 : vector<16x64xf32>
    %c0_50 = arith.constant 0 : index
    %c0_51 = arith.constant 0 : index
    %104 = vector.load %arg7[%c0_50, %c0_51] : memref<1x64xf32, #tpu.memory_space<vmem>>, vector<1x64xf32>
    %105 = vector.broadcast %104 : vector<1x64xf32> to vector<16x64xf32>
    %106 = arith.addf %103, %105 : vector<16x64xf32>
    %cst_52 = arith.constant 0.000000e+00 : f32
    %107 = vector.broadcast %cst_52 : f32 to vector<16x64xf32>
    %108 = arith.maximumf %106, %107 : vector<16x64xf32>
    %109 = arith.truncf %108 : vector<16x64xf32> to vector<16x64xbf16>
    %c0_53 = arith.constant 0 : index
    %c0_54 = arith.constant 0 : index
    %110 = vector.load %arg8[%c0_53, %c0_54] : memref<8x16xbf16, #tpu.memory_space<vmem>>, vector<8x16xbf16>
    %cst_55 = arith.constant dense<0.000000e+00> : vector<8x64xf32>
    %111 = tpu.matmul %110, %109, %cst_55 {dimension_numbers = #tpu.dot_dimension_numbers<[1], [0], [0], [1], [0, 0, 1, 1], [], []>} : vector<8x16xbf16>, vector<16x64xbf16>, vector<8x64xf32> -> vector<8x64xf32>
    %c0_56 = arith.constant 0 : index
    %c0_57 = arith.constant 0 : index
    %112 = vector.load %arg9[%c0_56, %c0_57] : memref<8x16xbf16, #tpu.memory_space<vmem>>, vector<8x16xbf16>
    %cst_58 = arith.constant dense<0.000000e+00> : vector<8x64xf32>
    %113 = tpu.matmul %112, %109, %cst_58 {dimension_numbers = #tpu.dot_dimension_numbers<[1], [0], [0], [1], [0, 0, 1, 1], [], []>} : vector<8x16xbf16>, vector<16x64xbf16>, vector<8x64xf32> -> vector<8x64xf32>
    %114 = arith.maximumf %111, %113 : vector<8x64xf32>
    %cst_59 = arith.constant 0.000000e+00 : f32
    %115 = vector.broadcast %cst_59 : f32 to vector<2x128xf32>
    %116 = vector.extract_strided_slice %114 {offsets = [0, 0], sizes = [2, 64], strides = [1, 1]} : vector<8x64xf32> to vector<2x64xf32>
    %117 = arith.truncf %116 : vector<2x64xf32> to vector<2x64xbf16>
    %c0_60 = arith.constant 0 : index
    %c0_61 = arith.constant 0 : index
    %c0_62 = arith.constant 0 : index
    %118 = vector.load %arg10[%c0_60, %c0_61, %c0_62] : memref<4x64x128xbf16, #tpu.memory_space<vmem>>, vector<1x64x128xbf16>
    %119 = vector.shape_cast %118 : vector<1x64x128xbf16> to vector<64x128xbf16>
    %cst_63 = arith.constant dense<0.000000e+00> : vector<2x128xf32>
    %120 = tpu.matmul %117, %119, %cst_63 {dimension_numbers = #tpu.dot_dimension_numbers<[1], [0], [0], [1], [0, 0, 1, 1], [], []>} : vector<2x64xbf16>, vector<64x128xbf16>, vector<2x128xf32> -> vector<2x128xf32>
    %121 = arith.addf %115, %120 : vector<2x128xf32>
    %122 = vector.extract_strided_slice %114 {offsets = [2, 0], sizes = [2, 64], strides = [1, 1]} : vector<8x64xf32> to vector<2x64xf32>
    %123 = arith.truncf %122 : vector<2x64xf32> to vector<2x64xbf16>
    %c1_64 = arith.constant 1 : index
    %c0_65 = arith.constant 0 : index
    %c0_66 = arith.constant 0 : index
    %124 = vector.load %arg10[%c1_64, %c0_65, %c0_66] : memref<4x64x128xbf16, #tpu.memory_space<vmem>>, vector<1x64x128xbf16>
    %125 = vector.shape_cast %124 : vector<1x64x128xbf16> to vector<64x128xbf16>
    %cst_67 = arith.constant dense<0.000000e+00> : vector<2x128xf32>
    %126 = tpu.matmul %123, %125, %cst_67 {dimension_numbers = #tpu.dot_dimension_numbers<[1], [0], [0], [1], [0, 0, 1, 1], [], []>} : vector<2x64xbf16>, vector<64x128xbf16>, vector<2x128xf32> -> vector<2x128xf32>
    %127 = arith.addf %121, %126 : vector<2x128xf32>
    %128 = vector.extract_strided_slice %114 {offsets = [4, 0], sizes = [2, 64], strides = [1, 1]} : vector<8x64xf32> to vector<2x64xf32>
    %129 = arith.truncf %128 : vector<2x64xf32> to vector<2x64xbf16>
    %c2_68 = arith.constant 2 : index
    %c0_69 = arith.constant 0 : index
    %c0_70 = arith.constant 0 : index
    %130 = vector.load %arg10[%c2_68, %c0_69, %c0_70] : memref<4x64x128xbf16, #tpu.memory_space<vmem>>, vector<1x64x128xbf16>
    %131 = vector.shape_cast %130 : vector<1x64x128xbf16> to vector<64x128xbf16>
    %cst_71 = arith.constant dense<0.000000e+00> : vector<2x128xf32>
    %132 = tpu.matmul %129, %131, %cst_71 {dimension_numbers = #tpu.dot_dimension_numbers<[1], [0], [0], [1], [0, 0, 1, 1], [], []>} : vector<2x64xbf16>, vector<64x128xbf16>, vector<2x128xf32> -> vector<2x128xf32>
    %133 = arith.addf %127, %132 : vector<2x128xf32>
    %134 = vector.extract_strided_slice %114 {offsets = [6, 0], sizes = [2, 64], strides = [1, 1]} : vector<8x64xf32> to vector<2x64xf32>
    %135 = arith.truncf %134 : vector<2x64xf32> to vector<2x64xbf16>
    %c3 = arith.constant 3 : index
    %c0_72 = arith.constant 0 : index
    %c0_73 = arith.constant 0 : index
    %136 = vector.load %arg10[%c3, %c0_72, %c0_73] : memref<4x64x128xbf16, #tpu.memory_space<vmem>>, vector<1x64x128xbf16>
    %137 = vector.shape_cast %136 : vector<1x64x128xbf16> to vector<64x128xbf16>
    %cst_74 = arith.constant dense<0.000000e+00> : vector<2x128xf32>
    %138 = tpu.matmul %135, %137, %cst_74 {dimension_numbers = #tpu.dot_dimension_numbers<[1], [0], [0], [1], [0, 0, 1, 1], [], []>} : vector<2x64xbf16>, vector<64x128xbf16>, vector<2x128xf32> -> vector<2x128xf32>
    %139 = arith.addf %133, %138 : vector<2x128xf32>
    %c0_75 = arith.constant 0 : index
    %c0_76 = arith.constant 0 : index
    %140 = vector.load %arg11[%c0_75, %c0_76] : memref<1x128xf32, #tpu.memory_space<vmem>>, vector<1x128xf32>
    %141 = vector.broadcast %140 : vector<1x128xf32> to vector<2x128xf32>
    %142 = arith.addf %139, %141 : vector<2x128xf32>
    %cst_77 = arith.constant 0.000000e+00 : f32
    %143 = vector.broadcast %cst_77 : f32 to vector<2x128xf32>
    %144 = arith.maximumf %142, %143 : vector<2x128xf32>
    %145 = arith.truncf %144 : vector<2x128xf32> to vector<2x128xbf16>
    %c0_78 = arith.constant 0 : index
    %c0_79 = arith.constant 0 : index
    %146 = vector.load %arg12[%c0_78, %c0_79] : memref<128x128xbf16, #tpu.memory_space<vmem>>, vector<128x128xbf16>
    %cst_80 = arith.constant dense<0.000000e+00> : vector<2x128xf32>
    %147 = tpu.matmul %145, %146, %cst_80 {dimension_numbers = #tpu.dot_dimension_numbers<[1], [0], [0], [1], [0, 0, 1, 1], [], []>} : vector<2x128xbf16>, vector<128x128xbf16>, vector<2x128xf32> -> vector<2x128xf32>
    %c0_81 = arith.constant 0 : index
    %c0_82 = arith.constant 0 : index
    %148 = vector.load %arg13[%c0_81, %c0_82] : memref<1x128xf32, #tpu.memory_space<vmem>>, vector<1x128xf32>
    %149 = vector.broadcast %148 : vector<1x128xf32> to vector<2x128xf32>
    %150 = arith.addf %147, %149 : vector<2x128xf32>
    %cst_83 = arith.constant 0.000000e+00 : f32
    %151 = vector.broadcast %cst_83 : f32 to vector<2x128xf32>
    %152 = arith.maximumf %150, %151 : vector<2x128xf32>
    %153 = arith.truncf %152 : vector<2x128xf32> to vector<2x128xbf16>
    %c0_84 = arith.constant 0 : index
    %c0_85 = arith.constant 0 : index
    %154 = vector.load %arg14[%c0_84, %c0_85] : memref<128x128xbf16, #tpu.memory_space<vmem>>, vector<128x128xbf16>
    %cst_86 = arith.constant dense<0.000000e+00> : vector<2x128xf32>
    %155 = tpu.matmul %153, %154, %cst_86 {dimension_numbers = #tpu.dot_dimension_numbers<[1], [0], [0], [1], [0, 0, 1, 1], [], []>} : vector<2x128xbf16>, vector<128x128xbf16>, vector<2x128xf32> -> vector<2x128xf32>
    %c0_87 = arith.constant 0 : index
    %c0_88 = arith.constant 0 : index
    %156 = vector.load %arg15[%c0_87, %c0_88] : memref<1x128xf32, #tpu.memory_space<vmem>>, vector<1x128xf32>
    %157 = vector.broadcast %156 : vector<1x128xf32> to vector<2x128xf32>
    %158 = arith.addf %155, %157 : vector<2x128xf32>
    %c0_89 = arith.constant 0 : index
    %c0_90 = arith.constant 0 : index
    %159 = vector.load %arg16[%c0_89, %c0_90] : memref<2x128xf32, #tpu.memory_space<vmem>>, vector<2x128xf32>
    tpu.vector_store %arg16[%c0_89, %c0_90], %158 {strides = array<i32>} : memref<2x128xf32, #tpu.memory_space<vmem>>, vector<2x128xf32>,
    return
  }
  func.func @transform_0(%arg0: i32) -> (i32, i32) {
    %c0_i32 = arith.constant 0 : i32
    %c0_i32_0 = arith.constant 0 : i32
    return %arg0, %c0_i32 : i32, i32
  }
  func.func @transform_1(%arg0: i32) -> (i32, i32, i32) {
    %c0_i32 = arith.constant 0 : i32
    %c0_i32_0 = arith.constant 0 : i32
    %c0_i32_1 = arith.constant 0 : i32
    %c0_i32_2 = arith.constant 0 : i32
    return %c0_i32, %c0_i32_0, %c0_i32_1 : i32, i32, i32
  }
  func.func @transform_2(%arg0: i32) -> (i32, i32) {
    %c0_i32 = arith.constant 0 : i32
    %c0_i32_0 = arith.constant 0 : i32
    %c0_i32_1 = arith.constant 0 : i32
    return %c0_i32, %c0_i32_0 : i32, i32
  }
  func.func @transform_3(%arg0: i32) -> (i32, i32) {
    %c0_i32 = arith.constant 0 : i32
    %c0_i32_0 = arith.constant 0 : i32
    %c0_i32_1 = arith.constant 0 : i32
    return %c0_i32, %c0_i32_0 : i32, i32
  }
  func.func @transform_4(%arg0: i32) -> (i32, i32) {
    %c0_i32 = arith.constant 0 : i32
    %c0_i32_0 = arith.constant 0 : i32
    %c0_i32_1 = arith.constant 0 : i32
    return %c0_i32, %c0_i32_0 : i32, i32
  }
  func.func @transform_5(%arg0: i32) -> (i32, i32, i32) {
    %c0_i32 = arith.constant 0 : i32
    %c0_i32_0 = arith.constant 0 : i32
    %c0_i32_1 = arith.constant 0 : i32
    %c0_i32_2 = arith.constant 0 : i32
    return %c0_i32, %c0_i32_0, %c0_i32_1 : i32, i32, i32
  }
  func.func @transform_6(%arg0: i32) -> (i32, i32) {
    %c0_i32 = arith.constant 0 : i32
    %c0_i32_0 = arith.constant 0 : i32
    %c0_i32_1 = arith.constant 0 : i32
    return %c0_i32, %c0_i32_0 : i32, i32
  }
  func.func @transform_7(%arg0: i32) -> (i32, i32) {
    %c0_i32 = arith.constant 0 : i32
    %c0_i32_0 = arith.constant 0 : i32
    %c0_i32_1 = arith.constant 0 : i32
    return %c0_i32, %c0_i32_0 : i32, i32
  }
  func.func @transform_8(%arg0: i32) -> (i32, i32) {
    %c0_i32 = arith.constant 0 : i32
    %c0_i32_0 = arith.constant 0 : i32
    %c0_i32_1 = arith.constant 0 : i32
    return %c0_i32, %c0_i32_0 : i32, i32
  }
  func.func @transform_9(%arg0: i32) -> (i32, i32, i32) {
    %c0_i32 = arith.constant 0 : i32
    %c0_i32_0 = arith.constant 0 : i32
    %c0_i32_1 = arith.constant 0 : i32
    %c0_i32_2 = arith.constant 0 : i32
    return %c0_i32, %c0_i32_0, %c0_i32_1 : i32, i32, i32
  }
  func.func @transform_10(%arg0: i32) -> (i32, i32) {
    %c0_i32 = arith.constant 0 : i32
    %c0_i32_0 = arith.constant 0 : i32
    %c0_i32_1 = arith.constant 0 : i32
    return %c0_i32, %c0_i32_0 : i32, i32
  }
  func.func @transform_11(%arg0: i32) -> (i32, i32) {
    %c0_i32 = arith.constant 0 : i32
    %c0_i32_0 = arith.constant 0 : i32
    %c0_i32_1 = arith.constant 0 : i32
    return %c0_i32, %c0_i32_0 : i32, i32
  }
  func.func @transform_12(%arg0: i32) -> (i32, i32) {
    %c0_i32 = arith.constant 0 : i32
    %c0_i32_0 = arith.constant 0 : i32
    %c0_i32_1 = arith.constant 0 : i32
    return %c0_i32, %c0_i32_0 : i32, i32
  }
  func.func @transform_13(%arg0: i32) -> (i32, i32) {
    %c0_i32 = arith.constant 0 : i32
    %c0_i32_0 = arith.constant 0 : i32
    %c0_i32_1 = arith.constant 0 : i32
    return %c0_i32, %c0_i32_0 : i32, i32
  }
  func.func @transform_14(%arg0: i32) -> (i32, i32) {
    %c0_i32 = arith.constant 0 : i32
    %c0_i32_0 = arith.constant 0 : i32
    %c0_i32_1 = arith.constant 0 : i32
    return %c0_i32, %c0_i32_0 : i32, i32
  }
  func.func @transform_15(%arg0: i32) -> (i32, i32) {
    %c0_i32 = arith.constant 0 : i32
    %c0_i32_0 = arith.constant 0 : i32
    return %arg0, %c0_i32 : i32, i32
  }
}

</mosaic_0001>

<bundles_post_ra>
// kernel: critic_pallas.1
= control target key start
LH: loop header
LB: loop body
LE: loop exit
PB: predicated region body
PF: predicated region fallthrough
CT: control target
= control target key end

     0   :  { %20 = vsyncpa [#allocation3], 0  ;;  %s3135_s0 = inlined_call_operand.vmem [shape: f32[32,64], index: 0, kind: input, shape index: {}]   ;;  %s3136_s1 = inlined_call_operand.vmem [shape: bf16[3,64,256], index: 1, kind: input, shape index: {}]   ;;  %s3137_s2 = inlined_call_operand.vmem [shape: f32[1,128], index: 2, kind: input, shape index: {}]   ;;  %s3138_s3 = inlined_call_operand.hbm [shape: bf16[16,32], index: 3, kind: input, shape index: {}]   ;;  %s3139_s4 = inlined_call_operand.hbm [shape: bf16[16,32], index: 4, kind: input, shape index: {}]   ;;  %s3140_s5 = inlined_call_operand.vmem [shape: bf16[3,128,128], index: 5, kind: input, shape index: {}]   ;;  %s3141_s6 = inlined_call_operand.hbm [shape: f32[1,64], index: 6, kind: input, shape index: {}]   ;;  %s3142_s7 = inlined_call_operand.vmem [shape: bf16[8,16], index: 7, kind: input, shape index: {}]   ;;  %s3143_s8 = inlined_call_operand.hbm [shape: bf16[8,16], index: 8, kind: input, shape index: {}]   ;;  %s3144_s9 = inlined_call_operand.vmem [shape: bf16[4,64,128], index: 9, kind: input, shape index: {}]   ;;  %s3145_s10 = inlined_call_operand.hbm [shape: f32[1,128], index: 10, kind: input, shape index: {}]   ;;  %s3146_s11 = inlined_call_operand.vmem [shape: bf16[128,128], index: 11, kind: input, shape index: {}]   ;;  %s3147_s12 = inlined_call_operand.hbm [shape: f32[1,128], index: 12, kind: input, shape index: {}]   ;;  %s3148_s13 = inlined_call_operand.hbm [shape: bf16[128,128], index: 13, kind: input, shape index: {}]   ;;  %s3149_s14 = inlined_call_operand.hbm [shape: f32[1,128], index: 14, kind: input, shape index: {}]   ;;  %s3150_s15 = inlined_call_operand.vmem [shape: f32[2,128], index: 15, kind: output, shape index: {}]  }
   0x1   :  { %21 = vsyncpa [#allocation5], 0 }
   0x2   :  { %22 = vsyncpa [#allocation8], 0 }
   0x3   :  { %23 = vsyncpa [#allocation11], 0 }
   0x4   :  { %24 = vsyncpa [#allocation14], 0  ;;  %s2488_s18 = smov [#allocation4]   ;;  %s2489_s20 = smov [#allocation7]  }
   0x5   :  { %s48_s19 = sshll.u32 %s2488_s18, 4  ;;  %s75_s21 = sshll.u32 %s2489_s20, 4  ;;  %s49_s19 = int_to_ptr.vmem [resolvable:$true] %s48_s19  ;;  %s76_s21 = int_to_ptr.vmem [resolvable:$true] %s75_s21 }
   0x6   :  { %s2302_s24 = scalar_lea.hbm %s3139_s4, 128 }
   0x7   :  { %p2303_p0 = scmp.ne.s32.totalorder %s3139_s4, %s2302_s24  ;;  %p2306_p1 = scmp.lt.u32.totalorder %s2302_s24, %s3139_s4 }
   0x9   :  { %p2308_p2 = pnand %p2306_p1, %p2303_p0 }
   0xb   :  { %2311 = shalt.err (!%p2308_p2)
}
   0xc   :  { %s2312_s29 = scalar_lea.vmem %s49_s19, 128  ;;  %p2317_p4 = scmp.lt.s32.totalorder %s49_s19, %s49_s19 }
   0xd   :  { %p2313_p3 = scmp.ne.s32.totalorder %s49_s19, %s2312_s29  ;;  %p2318_p5 = scmp.lt.s32.totalorder %s2312_s29, %s2312_s29 }
   0xf   :  { %p2319_p6 = por %p2318_p5, %p2317_p4 }
  0x11   :  { %p2320_p7 = pnand %p2319_p6, %p2313_p3 }
  0x13   :  { %2323 = shalt.err (!%p2320_p7)
}
  0x14   :  { %s2490_s30 = smov 64   ;;  %s2491_s16 = smov 4  }
  0x15   :  { %54 = dma.hbm_to_vmem [thread:$0]  %s3139_s4, 128, %s49_s19, [#allocation5], %s2490_s30, %s2490_s30, %s2491_s16  }
  0x16   :  { %s2324_s23 = scalar_lea.hbm %s3143_s8, 64 }
  0x17   :  { %p2325_p8 = scmp.ne.s32.totalorder %s3143_s8, %s2324_s23  ;;  %p2328_p9 = scmp.lt.u32.totalorder %s2324_s23, %s3143_s8 }
  0x19   :  { %p2330_p10 = pnand %p2328_p9, %p2325_p8 }
  0x1b   :  { %2333 = shalt.err (!%p2330_p10)
}
  0x1c   :  { %s2334_s28 = scalar_lea.vmem %s76_s21, 64  ;;  %p2339_p12 = scmp.lt.s32.totalorder %s76_s21, %s76_s21 }
  0x1d   :  { %p2335_p11 = scmp.ne.s32.totalorder %s76_s21, %s2334_s28  ;;  %p2340_p13 = scmp.lt.s32.totalorder %s2334_s28, %s2334_s28 }
  0x1f   :  { %p2341_p0 = por %p2340_p13, %p2339_p12 }
  0x21   :  { %p2342_p1 = pnand %p2341_p0, %p2335_p11 }
  0x23   :  { %2345 = shalt.err (!%p2342_p1)
}
  0x24   :  { %78 = dma.hbm_to_vmem [thread:$0]  %s3143_s8, 64, %s76_s21, [#allocation8]  }
  0x25   :  { %s2492_s29 = smov [#allocation10]   ;;  %s2493_s18 = smov [#allocation2]  }
  0x26   :  { %s99_s17 = sshll.u32 %s2492_s29, 4  ;;  %s36_s20 = sshll.u32 %s2493_s18, 4  ;;  %s100_s17 = int_to_ptr.vmem [resolvable:$true] %s99_s17  ;;  %s2608_s20 = int_to_ptr.vmem [resolvable:$true] %s36_s20 }
  0x27   :  { %s2346_s24 = scalar_lea.hbm %s3147_s12, 16 }
  0x28   :  { %p2347_p2 = scmp.ne.s32.totalorder %s3147_s12, %s2346_s24  ;;  %p2350_p3 = scmp.lt.u32.totalorder %s2346_s24, %s3147_s12 }
  0x2a   :  { %p2352_p4 = pnand %p2350_p3, %p2347_p2 }
  0x2c   :  { %2355 = shalt.err (!%p2352_p4)
}
  0x2d   :  { %s2356_s8 = scalar_lea.vmem %s100_s17, 16  ;;  %s2360_s21 = scalar_lea.vmem %s100_s17, 32 }
  0x2e   :  { %p2357_p5 = scmp.ne.s32.totalorder %s100_s17, %s2356_s8  ;;  %p2361_p6 = scmp.lt.s32.totalorder %s100_s17, %s100_s17 }
  0x2f   :  { %p2362_p7 = scmp.lt.s32.totalorder %s2360_s21, %s2356_s8 }
  0x31   :  { %p2363_p8 = por %p2362_p7, %p2361_p6 }
  0x33   :  { %p2364_p9 = pnand %p2363_p8, %p2357_p5 }
  0x35   :  { %2367 = shalt.err (!%p2364_p9)
}
  0x36   :  { %102 = dma.hbm_to_vmem [thread:$0]  %s3147_s12, 16, %s100_s17, [#allocation11]  }
  0x37   :  { %s2368_s22 = scalar_lea.hbm %s3138_s3, 128 }
  0x38   :  { %p2369_p10 = scmp.ne.s32.totalorder %s3138_s3, %s2368_s22  ;;  %p2372_p11 = scmp.lt.u32.totalorder %s2368_s22, %s3138_s3 }
  0x3a   :  { %p2374_p12 = pnand %p2372_p11, %p2369_p10 }
  0x3c   :  { %2377 = shalt.err (!%p2374_p12)
}
  0x3d   :  { %s2378_s27 = scalar_lea.vmem %s2608_s20, 128  ;;  %p2383_p0 = scmp.lt.s32.totalorder %s2608_s20, %s2608_s20 }
  0x3e   :  { %p2379_p13 = scmp.ne.s32.totalorder %s2608_s20, %s2378_s27  ;;  %p2384_p1 = scmp.lt.s32.totalorder %s2378_s27, %s2378_s27 }
  0x40   :  { %p2385_p2 = por %p2384_p1, %p2383_p0 }
  0x42   :  { %p2386_p3 = pnand %p2385_p2, %p2379_p13 }
  0x44   :  { %2389 = shalt.err (!%p2386_p3)
}
  0x45   :  { %42 = dma.hbm_to_vmem [thread:$0]  %s3138_s3, 128, %s2608_s20, [#allocation3], %s2490_s30, %s2490_s30, %s2491_s16  }
  0x46   :  { %s2494_s28 = smov [#allocation6]   ;;  %s2495_s21 = smov [#allocation9]  }
  0x47   :  { %s63_s8 = sshll.u32 %s2494_s28, 4  ;;  %s87_s4 = sshll.u32 %s2495_s21, 4  ;;  %s64_s8 = int_to_ptr.vmem [resolvable:$true] %s63_s8  ;;  %s88_s4 = int_to_ptr.vmem [resolvable:$true] %s87_s4 }
  0x48   :  { %s2390_s18 = scalar_lea.hbm %s3141_s6, 16 }
  0x49   :  { %p2391_p4 = scmp.ne.s32.totalorder %s3141_s6, %s2390_s18  ;;  %p2394_p5 = scmp.lt.u32.totalorder %s2390_s18, %s3141_s6 }
  0x4b   :  { %p2396_p6 = pnand %p2394_p5, %p2391_p4 }
  0x4d   :  { %2399 = shalt.err (!%p2396_p6)
}
  0x4e   :  { %s2400_s3 = scalar_lea.vmem %s64_s8, 16  ;;  %s2404_s20 = scalar_lea.vmem %s64_s8, 32 }
  0x4f   :  { %p2401_p7 = scmp.ne.s32.totalorder %s64_s8, %s2400_s3  ;;  %p2405_p8 = scmp.lt.s32.totalorder %s64_s8, %s64_s8 }
  0x50   :  { %p2406_p9 = scmp.lt.s32.totalorder %s2404_s20, %s2400_s3 }
  0x52   :  { %p2407_p10 = por %p2406_p9, %p2405_p8 }
  0x54   :  { %p2408_p11 = pnand %p2407_p10, %p2401_p7 }
  0x56   :  { %2411 = shalt.err (!%p2408_p11)
}
  0x57   :  { %66 = dma.hbm_to_vmem [thread:$0]  %s3141_s6, 16, %s64_s8, [#allocation5]  }
  0x58   :  { %s2412_s28 = scalar_lea.hbm %s3145_s10, 16 }
  0x59   :  { %p2413_p12 = scmp.ne.s32.totalorder %s3145_s10, %s2412_s28  ;;  %p2416_p13 = scmp.lt.u32.totalorder %s2412_s28, %s3145_s10 }
  0x5b   :  { %p2418_p0 = pnand %p2416_p13, %p2413_p12 }
  0x5d   :  { %2421 = shalt.err (!%p2418_p0)
}
  0x5e   :  { %s2422_s22 = scalar_lea.vmem %s88_s4, 16  ;;  %s2426_s23 = scalar_lea.vmem %s88_s4, 32 }
  0x5f   :  { %p2423_p1 = scmp.ne.s32.totalorder %s88_s4, %s2422_s22  ;;  %p2427_p2 = scmp.lt.s32.totalorder %s88_s4, %s88_s4 }
  0x60   :  { %p2428_p3 = scmp.lt.s32.totalorder %s2426_s23, %s2422_s22 }
  0x62   :  { %p2429_p4 = por %p2428_p3, %p2427_p2 }
  0x64   :  { %p2430_p5 = pnand %p2429_p4, %p2423_p1 }
  0x66   :  { %2433 = shalt.err (!%p2430_p5)
}
  0x67   :  { %90 = dma.hbm_to_vmem [thread:$0]  %s3145_s10, 16, %s88_s4, [#allocation8]  }
  0x68   :  { %s2496_s24 = smov [#allocation12]   ;;  %s2497_s3 = smov [#allocation13]  }
  0x69   :  { %s108_s25 = sshll.u32 %s2496_s24, 4  ;;  %s121_s20 = sshll.u32 %s2497_s3, 4  ;;  %s109_s25 = int_to_ptr.vmem [resolvable:$true] %s108_s25  ;;  %s122_s20 = int_to_ptr.vmem [resolvable:$true] %s121_s20 }
  0x6a   :  { %s2434_s12 = scalar_lea.hbm %s3148_s13, 1024 }
  0x6b   :  { %p2435_p6 = scmp.ne.s32.totalorder %s3148_s13, %s2434_s12  ;;  %p2438_p7 = scmp.lt.u32.totalorder %s2434_s12, %s3148_s13 }
  0x6d   :  { %p2440_p8 = pnand %p2438_p7, %p2435_p6 }
  0x6f   :  { %2443 = shalt.err (!%p2440_p8)
}
  0x70   :  { %s2444_s10 = scalar_lea.vmem %s109_s25, 1024  ;;  %p2449_p10 = scmp.lt.s32.totalorder %s109_s25, %s109_s25 }
  0x71   :  { %p2445_p9 = scmp.ne.s32.totalorder %s109_s25, %s2444_s10  ;;  %p2450_p11 = scmp.lt.s32.totalorder %s2444_s10, %s2444_s10 }
  0x73   :  { %p2451_p12 = por %p2450_p11, %p2449_p10 }
  0x75   :  { %p2452_p13 = pnand %p2451_p12, %p2445_p9 }
  0x77   :  { %2455 = shalt.err (!%p2452_p13)
}
  0x78   :  { %114 = dma.hbm_to_vmem [thread:$0]  %s3148_s13, 1024, %s109_s25, [#allocation11], %s2490_s30, %s2490_s30, %s2491_s16  }
  0x79   :  { %s2456_s23 = scalar_lea.hbm %s3149_s14, 16 }
  0x7a   :  { %p2457_p0 = scmp.ne.s32.totalorder %s3149_s14, %s2456_s23  ;;  %p2460_p1 = scmp.lt.u32.totalorder %s2456_s23, %s3149_s14 }
  0x7c   :  { %p2462_p2 = pnand %p2460_p1, %p2457_p0 }
  0x7e   :  { %2465 = shalt.err (!%p2462_p2)
}
  0x7f   :  { %s2466_s26 = scalar_lea.vmem %s122_s20, 16  ;;  %s2470_s27 = scalar_lea.vmem %s122_s20, 32 }
  0x80   :  { %p2467_p3 = scmp.ne.s32.totalorder %s122_s20, %s2466_s26  ;;  %p2471_p4 = scmp.lt.s32.totalorder %s122_s20, %s122_s20 }
  0x81   :  { %p2472_p5 = scmp.lt.s32.totalorder %s2470_s27, %s2466_s26 }
  0x83   :  { %p2473_p6 = por %p2472_p5, %p2471_p4 }
  0x85   :  { %p2474_p7 = pnand %p2473_p6, %p2467_p3 }
  0x87   :  { %2477 = shalt.err (!%p2474_p7)
}
  0x88   :  { %124 = dma.hbm_to_vmem [thread:$0]  %s3149_s14, 16, %s122_s20, [#allocation14]  }
  0x89   :  { %2478 = dma.done.wait [#allocation3], 128  }
  0x8a   :  { %2479 = vsyncadd [#allocation3], 4294967168 }
  0x8b   :  { %2480 = dma.done.wait [#allocation5], 144  }
  0x8c   :  { %2481 = vsyncadd [#allocation5], 4294967152 }
  0x8d   :  { %2482 = dma.done.wait [#allocation8], 80  }
  0x8e   :  { %2483 = vsyncadd [#allocation8], 4294967216 }
  0x8f   :  { %2484 = dma.done.wait [#allocation11], 1040  }
  0x90   :  { %2485 = vsyncadd [#allocation11], 4294966256 }
  0x91   :  { %2486 = dma.done.wait [#allocation14], 16  }
  0x92   :  { %2487 = vsyncadd [#allocation14], 4294967280  ;;  %v2498_v0 = vmov 0   ;;  %v154_v1 = vlaneseq  ;;  %v2208_v2 = vld [vmem:[%s3136_s1 + $0x44] ss:$8 sps:$4 sm:$0xff]   ;;  %v2737_v16 = vld [vmem:[%s3135_s0 + $0x10] sm:$0xff] }
  0x93   :  { %324 = vmatprep.mubr.bf16.mxu0 %v2498_v0  ;;  %v2210_v3 = vld [vmem:[%s3136_s1 + $0x40] ss:$8 sps:$4 sm:$0xff]   ;;  %292 = vmatprep.subr.bf16.mxu0 %v2208_v2  ;;  %v2211_v4 = vld [vmem:[%s3136_s1 + $0x54] ss:$8 sps:$4 sm:$0xff]   ;;  %v2213_v6 = vld [vmem:[%s3136_s1 + $0x50] ss:$8 sps:$4 sm:$0xff]  }
  0x94   :  { %v2703_v5 = vshrl.u32 %v154_v1, 7  ;;  %293 = vmatpush1.bf16.msra.mxu0 %v2210_v3  ;;  %v2214_v7 = vld [vmem:[%s3136_s1 + $0x64] ss:$8 sps:$4 sm:$0xff]   ;;  %v2216_v11 = vld [vmem:[%s3136_s1 + $0x60] ss:$8 sps:$4 sm:$0xff]   ;;  %v2745_v21 = vld [vmem:[%s3135_s0 + $0x18] sm:$0xff] }
  0x95   :  { %294 = vmatprep.subr.bf16.mxu0 %v2211_v4  ;;  %v2217_v12 = vld [vmem:[%s3136_s1 + $0x74] ss:$8 sps:$4 sm:$0xff]   ;;  %v2726_v14 = vld [vmem:[%s3135_s0] sm:$0xff]  ;;  %v2731_v15 = vld [vmem:[%s3135_s0 + $0x8] sm:$0xff]  ;;  %v209_v23 = vrot.slane %v2737_v16, 7  ;;  %v210_v24 = vrot.slane %v2745_v21, 7  ;;  %v235_v49 = vpack.c.bf16 %v2745_v21, %v2737_v16 }
  0x96   :  { %v2712_v8 = vadd.s32 8, %v2703_v5  ;;  %v157_v9 = vadd.s32 16, %v2703_v5  ;;  %v158_v10 = vadd.s32 24, %v2703_v5  ;;  %v163_v13 = vand.u32 15, %v2703_v5  ;;  %v2219_v27 = vld [vmem:[%s3136_s1 + $0x70] ss:$8 sps:$4 sm:$0xff]  }
  0x97   :  { %vm211_vm0 = vcmp.lt.s32.totalorder %v2703_v5, 1  ;;  %v207_v19 = vrot.slane %v2726_v14, 7  ;;  %v445_v20 = vrot.slane %v2731_v15, 1  ;;  %v446_v25 = vrot.slane %v2737_v16, 1  ;;  %v2222_v31 = vld [vmem:[%s3136_s1 + $0x4] ss:$8 sps:$4 sm:$0xff]  }
  0x98   :  { %295 = vmatpush1.bf16.msra.mxu0 %v2213_v6  ;;  %v170_v17 = vand.u32 15, %v2712_v8  ;;  %v177_v18 = vand.u32 15, %v157_v9  ;;  %v184_v22 = vand.u32 15, %v158_v10  ;;  %v447_v26 = vrot.slane %v2745_v21, 1  ;;  %v2220_v40 = vld [vmem:[%s3136_s1] ss:$8 sps:$4 sm:$0xff]  }
  0x99   :  { %296 = vmatprep.subr.bf16.mxu0 %v2214_v7  ;;  %vm448_vm1 = vcmp.lt.s32.totalorder %v2703_v5, 7  ;;  %vm2755_vm2 = vcmp.eq.s32.totalorder %v163_v13, 0  ;;  %v208_v29 = vrot.slane %v2731_v15, 7  ;;  %v444_v30 = vrot.slane %v2726_v14, 1  ;;  %v2225_v41 = vld [vmem:[%s3136_s1 + $0x14] ss:$8 sps:$4 sm:$0xff]  }
  0x9a   :  { %v234_v32 = vpack.c.bf16 %v2731_v15, %v2726_v14  ;;  %vm2766_vm3 = vcmp.eq.s32.totalorder %v170_v17, 15  ;;  %vm2770_vm4 = vcmp.eq.s32.totalorder %v177_v18, 0  ;;  %vm2774_vm5 = vcmp.eq.s32.totalorder %v184_v22, 15  ;;  %v2223_v42 = vld [vmem:[%s3136_s1 + $0x10] ss:$8 sps:$4 sm:$0xff]   ;;  %v2247_v33 = vld [vmem:[%s3140_s5 + $0x48] sm:$0xff]  }
  0x9b   :  { %v215_v36 = vsel %vm211_vm0, %v210_v24, %v207_v19  ;;  %v450_v37 = vsel %vm448_vm1, %v445_v20, %v446_v25  ;;  %v213_v38 = vsel %vm211_vm0, %v208_v29, %v209_v23  ;;  %v452_v39 = vsel %vm448_vm1, %v447_v26, %v444_v30  ;;  %v2228_v47 = vld [vmem:[%s3136_s1 + $0x24] ss:$8 sps:$4 sm:$0xff]   ;;  %v2226_v48 = vld [vmem:[%s3136_s1 + $0x20] ss:$8 sps:$4 sm:$0xff]   ;;  %v2231_v50 = vld [vmem:[%s3136_s1 + $0x34] ss:$8 sps:$4 sm:$0xff]  }
  0x9c   :  { %297 = vmatpush1.bf16.msra.mxu0 %v2216_v11  ;;  %vm285_vm6 = vcmask 523264   ;;  %v220_v43 = vsel %vm2755_vm2, 0.0, %v215_v36  ;;  %v458_v44 = vsel %vm2766_vm3, 0.0, %v450_v37  ;;  %v222_v45 = vsel %vm2770_vm4, 0.0, %v213_v38  ;;  %v2229_v51 = vld [vmem:[%s3136_s1 + $0x30] ss:$8 sps:$4 sm:$0xff]  }
  0x9d   :  { %298 = vmatprep.subr.bf16.mxu0 %v2217_v12  ;;  %v460_v46 = vsel %vm2774_vm5, 0.0, %v452_v39  ;;  %v2234_v52 = vld [vmem:[%s3136_s1 + $0x84] ss:$8 sps:$4 sm:$0xff]   ;;  %v214_v53 = vsel %vm211_vm0, %v207_v19, %v208_v29  ;;  %v2232_v54 = vld [vmem:[%s3136_s1 + $0x80] ss:$8 sps:$4 sm:$0xff]   ;;  %v212_v59 = vsel %vm211_vm0, %v209_v23, %v210_v24  ;;  %v451_v1 = vsel %vm448_vm1, %v444_v30, %v445_v20  ;;  %v2248_v34 = vld [vmem:[%s3140_s5 + $0x50] sm:$0xff]  }
  0x9e   :  { %v224_v55 = vpack.c.bf16 %v214_v53, %v220_v43  ;;  %v2237_v56 = vld [vmem:[%s3136_s1 + $0x94] ss:$8 sps:$4 sm:$0xff]   ;;  %v2235_v57 = vld [vmem:[%s3136_s1 + $0x90] ss:$8 sps:$4 sm:$0xff]   ;;  %v2240_v58 = vld [vmem:[%s3136_s1 + $0xa4] ss:$8 sps:$4 sm:$0xff]   ;;  %v225_v61 = vpack.c.bf16 %v212_v59, %v222_v45  ;;  %v461_v2 = vpack.c.bf16 %v458_v44, %v451_v1  ;;  %v449_v3 = vsel %vm448_vm1, %v446_v25, %v447_v26 }
  0x9f   :  { %v2238_v60 = vld [vmem:[%s3136_s1 + $0xa0] ss:$8 sps:$4 sm:$0xff]   ;;  %v2243_v62 = vld [vmem:[%s3136_s1 + $0xb4] ss:$8 sps:$4 sm:$0xff]   ;;  %v2241_v63 = vld [vmem:[%s3136_s1 + $0xb0] ss:$8 sps:$4 sm:$0xff]   ;;  %v462_v4 = vpack.c.bf16 %v460_v46, %v449_v3 }
  0xa0   :  { %299 = vmatpush1.bf16.msra.mxu0 %v2219_v27  ;;  %v2499_v6 = vmov 0.0   ;;  %vm2500_vm7 = vmmov 0   ;;  %v1779_v9 = vld [vmem:[%s3137_s2] ss:$0 sm:$0xff]  ;;  %vm607_vm8 = vcmask 261120   ;;  %v2249_v35 = vld [vmem:[%s3140_s5 + $0x58] sm:$0xff]  }
  0xa1   :  { %391 = vmatprep.subr.bf16.mxu0 %v2222_v31  ;;  %1995 = vmatprep.subr.bf16.mxu1 %v2499_v6  ;;  %v2244_v30 = vld [vmem:[#allocation2] sm:$0xff]   ;;  %v2245_v31 = vld [vmem:[#allocation4] sm:$0xff]   ;;  %v2252_v38 = vld [vmem:[%s3140_s5 + $0x70] sm:$0xff]   ;;  %vm1090_vm15 = vcmask 130048  }
  0xa2   :  { %1999 = vmatprep.mubr.msk.bf16.mxu1 %vm2500_vm7, %v2499_v6  ;;  %v2250_v36 = vld [vmem:[%s3140_s5 + $0x60] sm:$0xff]   ;;  %v2251_v37 = vld [vmem:[%s3140_s5 + $0x68] sm:$0xff]   ;;  %v2253_v39 = vld [vmem:[%s3140_s5 + $0x78] sm:$0xff]  }
  0xa3   :  { %1749 = vmatmul.mubr.msk.bf16.vlgmr.msra.gmra.mrb[0].mxu0 %vm285_vm6, %v234_v32  ;;  %v2246_v32 = vld [vmem:[%s3140_s5 + $0x40] sm:$0xff]   ;;  %v2257_v1 = vld [vmem:[%s3140_s5 + $0x18] sm:$0xff]   ;;  %v2259_v3 = vld [vmem:[%s3140_s5 + $0x28] sm:$0xff]  }
  0xa4   :  { %392 = vmatpush1.bf16.msra.mxu0 %v2220_v40  ;;  %334 = vmatprep.mubr.bf16.mxu0 %v2498_v0 }
  0xa5   :  { %393 = vmatprep.subr.bf16.mxu0 %v2225_v41 }
  0xa8   :  { %394 = vmatpush1.bf16.msra.mxu0 %v2223_v42 }
  0xa9   :  { %395 = vmatprep.subr.bf16.mxu0 %v2228_v47 }
  0xab   :  { %1750 = vmatmul.mubr.msk.bf16.gmra.mrb[4].mxu0 %vm285_vm6, %v235_v49 }
  0xac   :  { %396 = vmatpush1.bf16.msra.mxu0 %v2226_v48  ;;  %423 = vmatprep.mubr.bf16.mxu0 %v2498_v0 }
  0xad   :  { %397 = vmatprep.subr.bf16.mxu0 %v2231_v50 }
  0xb0   :  { %398 = vmatpush1.bf16.msra.mxu0 %v2229_v51  ;;  %v2254_v51 = vld [vmem:[%s3140_s5] sm:$0xff]  }
  0xb1   :  { %518 = vmatprep.subr.bf16.mxu0 %v2234_v52 }
  0xb3   :  { %1759 = vmatmul.mubr.msk.bf16.vlgmr.msra.gmra.mrb[0].mxu0 %vm285_vm6, %v224_v55 }
  0xb4   :  { %519 = vmatpush1.bf16.msra.mxu0 %v2232_v54  ;;  %433 = vmatprep.mubr.bf16.mxu0 %v2498_v0 }
  0xb5   :  { %520 = vmatprep.subr.bf16.mxu0 %v2237_v56 }
  0xb8   :  { %521 = vmatpush1.bf16.msra.mxu0 %v2235_v57 }
  0xb9   :  { %522 = vmatprep.subr.bf16.mxu0 %v2240_v58 }
  0xbb   :  { %1760 = vmatmul.mubr.msk.bf16.gmra.mrb[4].mxu0 %vm285_vm6, %v225_v61 }
  0xbc   :  { %523 = vmatpush1.bf16.msra.mxu0 %v2238_v60  ;;  %550 = vmatprep.mubr.bf16.mxu0 %v2498_v0 }
  0xbd   :  { %524 = vmatprep.subr.bf16.mxu0 %v2243_v62  ;;  %v2255_v62 = vld [vmem:[%s3140_s5 + $0x8] sm:$0xff]  }
  0xc0   :  { %525 = vmatpush1.bf16.msra.mxu0 %v2241_v63  ;;  %v2256_v63 = vld [vmem:[%s3140_s5 + $0x10] sm:$0xff]  }
  0xc1   :  { %2071 = vmatprep.subr.bf16.mxu0 %v2499_v6 }
  0xc3   :  { %1777 = vmatmul.mubr.msk.bf16.vlgmr.msra.gmra.mrb[0].mxu0 %vm285_vm6, %v461_v2  ;;  %v2258_v2 = vld [vmem:[%s3140_s5 + $0x20] sm:$0xff]  }
  0xc4   :  { %560 = vmatprep.mubr.bf16.mxu0 %v2498_v0 }
  0xcb   :  { %1778 = vmatmul.mubr.msk.bf16.gmra.mrb[4].mxu0 %vm285_vm6, %v462_v4  ;;  %v2260_v4 = vld [vmem:[%s3140_s5 + $0x30] sm:$0xff]  }
  0xcc   :  { %2073 = vmatprep.mubr.msk.bf16.mxu0 %vm2500_vm7, %v2499_v6 }
 0x196   :  { %v552_v0 = vpop.f32.mrb[0].mxu0 }
 0x197   :  { %v554_v7 = vpop.f32.mrb[1].mxu0 }
 0x198   :  { %v579_v10 = vmax.f32 %v552_v0, %v554_v7  ;;  %v556_v11 = vpop.f32.mrb[2].mxu0  ;;  %v709_v0 = vand.u32 7, %v2703_v5  ;;  %v716_v7 = vand.u32 7, %v2712_v8  ;;  %v2263_v5 = vld [vmem:[%s3140_s5 + $0x88] sm:$0xff]   ;;  %v2264_v8 = vld [vmem:[%s3140_s5 + $0x90] sm:$0xff]  }
 0x199   :  { %v558_v12 = vpop.f32.mrb[3].mxu0 }
 0x19a   :  { %v590_v13 = vadd.f32 %v1779_v9, %v579_v10  ;;  %v580_v14 = vmax.f32 %v556_v11, %v558_v12  ;;  %vm1916_vm9 = vcmp.ne.s32.totalorder %v716_v7, 0  ;;  %vm1917_vm10 = vcmp.ne.s32.totalorder %v709_v0, 0  ;;  %v2262_v10 = vld [vmem:[%s3140_s5 + $0x80] sm:$0xff]   ;;  %v2265_v11 = vld [vmem:[%s3140_s5 + $0x98] sm:$0xff]  }
 0x19b   :  { %vm1818_vm11 = vmpackc.low %vm1916_vm9, %vm1917_vm10  ;;  %v2266_v12 = vld [vmem:[%s3140_s5 + $0xa0] sm:$0xff]   ;;  %vm1918_vm12 = vcmp.ne.s32.totalorder %v716_v7, 7  ;;  %vm1919_vm13 = vcmp.ne.s32.totalorder %v709_v0, 7  ;;  %v2293_v0 = vld [vmem:[%s3146_s11 + $0x38] sm:$0xff]  }
 0x19c   :  { %v591_v15 = vadd.f32 %v1779_v9, %v580_v14  ;;  %v594_v16 = vmax.f32 %v590_v13, 0.0  ;;  %v2267_v13 = vld [vmem:[%s3140_s5 + $0xa8] sm:$0xff]   ;;  %v2268_v14 = vld [vmem:[%s3140_s5 + $0xb0] sm:$0xff]   ;;  %vm1847_vm14 = vmpackc.low %vm1918_vm12, %vm1919_vm13 }
 0x19d   :  { %v2294_v7 = vld [vmem:[#allocation12] sm:$0xff]  }
 0x19e   :  { %v595_v17 = vmax.f32 %v591_v15, 0.0  ;;  %v562_v18 = vpop.f32.mrb[4].mxu0  ;;  %v2269_v15 = vld [vmem:[%s3140_s5 + $0xb8] sm:$0xff]  }
 0x19f   :  { %v564_v19 = vpop.f32.mrb[5].mxu0 }
 0x1a0   :  { %v581_v20 = vmax.f32 %v562_v18, %v564_v19  ;;  %v566_v21 = vpop.f32.mrb[6].mxu0  ;;  %v598_v22 = vpack.c.bf16 %v595_v17, %v594_v16 }
 0x1a1   :  { %v568_v23 = vpop.f32.mrb[7].mxu0 }
 0x1a2   :  { %v592_v24 = vadd.f32 %v1779_v9, %v581_v20  ;;  %v582_v25 = vmax.f32 %v566_v21, %v568_v23  ;;  %1996 = vmatpush3.bf16.msra.mxu1 %v598_v22  ;;  %v2271_v20 = vld [vmem:[%s3144_s9 + $0x60] sm:$0xff]   ;;  %v1850_v23 = vld [vmem:[#allocation6] ss:$0 sm:$0xff] }
 0x1a3   :  { %1997 = vmatprep.subr.bf16.mxu1 %v2499_v6 }
 0x1a4   :  { %v593_v26 = vadd.f32 %v1779_v9, %v582_v25  ;;  %v596_v27 = vmax.f32 %v592_v24, 0.0  ;;  %v2261_v9 = vld [vmem:[%s3140_s5 + $0x38] sm:$0xff]  }
 0x1a6   :  { %v597_v28 = vmax.f32 %v593_v26, 0.0 }
 0x1a8   :  { %v599_v29 = vpack.c.bf16 %v597_v28, %v596_v27 }
 0x1aa   :  { %1998 = vmatpush3.bf16.msra.mxu1 %v599_v29 }
 0x1ab   :  { %2003 = vmatprep.subr.bf16.mxu1 %v2499_v6 }
 0x1ad   :  { %2000 = vmatmul.mubr.msk.bf16.vlgmr.msra.gmra.mrb[0].mxu1 %vm607_vm8, %v2244_v30 }
 0x1ae   :  { %2004 = vmatpush3.bf16.msra.mxu1 %v598_v22  ;;  %2007 = vmatprep.mubr.msk.bf16.mxu1 %vm2500_vm7, %v2499_v6 }
 0x1af   :  { %2005 = vmatprep.subr.bf16.mxu1 %v2499_v6 }
 0x1b2   :  { %2006 = vmatpush3.bf16.msra.mxu1 %v599_v29 }
 0x1b3   :  { %2011 = vmatprep.subr.bf16.mxu1 %v2499_v6 }
 0x1b5   :  { %2008 = vmatmul.mubr.msk.bf16.vlgmr.msra.gmra.mrb[4].mxu1 %vm607_vm8, %v2245_v31  ;;  %v1089_v31 = vld [vmem:[%s3142_s7] sm:$0xf] }
 0x1b6   :  { %2012 = vmatpush3.bf16.msra.mxu1 %v2246_v32  ;;  %2027 = vmatprep.mubr.msk.bf16.mxu1 %vm2500_vm7, %v2499_v6  ;;  %v1134_v32 = vld [vmem:[#allocation7] sm:$0xf] }
 0x1b7   :  { %2013 = vmatprep.subr.bf16.mxu1 %v2499_v6 }
 0x1ba   :  { %2014 = vmatpush3.bf16.msra.mxu1 %v2247_v33  ;;  %v2270_v33 = vld [vmem:[%s3144_s9 + $0x20] sm:$0xff]  }
 0x1bb   :  { %2015 = vmatprep.subr.bf16.mxu1 %v2499_v6 }
 0x1be   :  { %2016 = vmatpush3.bf16.msra.mxu1 %v2248_v34  ;;  %v2272_v34 = vld [vmem:[%s3144_s9 + $0x28] sm:$0xff]  }
 0x1bf   :  { %2017 = vmatprep.subr.bf16.mxu1 %v2499_v6 }
 0x1c2   :  { %2018 = vmatpush3.bf16.msra.mxu1 %v2249_v35  ;;  %v2273_v35 = vld [vmem:[%s3144_s9 + $0x68] sm:$0xff]  }
 0x1c3   :  { %2019 = vmatprep.subr.bf16.mxu1 %v2499_v6 }
 0x1c6   :  { %2020 = vmatpush3.bf16.msra.mxu1 %v2250_v36  ;;  %v2274_v36 = vld [vmem:[%s3144_s9 + $0x30] sm:$0xff]  }
 0x1c7   :  { %2021 = vmatprep.subr.bf16.mxu1 %v2499_v6 }
 0x1ca   :  { %2022 = vmatpush3.bf16.msra.mxu1 %v2251_v37  ;;  %v2275_v37 = vld [vmem:[%s3144_s9 + $0x70] sm:$0xff]  }
 0x1cb   :  { %2023 = vmatprep.subr.bf16.mxu1 %v2499_v6 }
 0x1ce   :  { %2024 = vmatpush3.bf16.msra.mxu1 %v2252_v38  ;;  %v2276_v38 = vld [vmem:[%s3144_s9 + $0x38] sm:$0xff]  }
 0x1cf   :  { %2025 = vmatprep.subr.bf16.mxu1 %v2499_v6 }
 0x1d2   :  { %2026 = vmatpush3.bf16.msra.mxu1 %v2253_v39  ;;  %v2277_v39 = vld [vmem:[%s3144_s9 + $0x78] sm:$0xff]  }
 0x1d3   :  { %2031 = vmatprep.subr.bf16.mxu1 %v2499_v6 }
 0x280   :  { %v645_v40 = vpop.f32.mrb[0].mxu1 }
 0x281   :  { %v2001_v41 = vpop.f32.mrb[1].mxu1 }
 0x282   :  { %v648_v42 = vpop.f32.mrb[2].mxu1 }
 0x283   :  { %v2002_v43 = vpop.f32.mrb[3].mxu1 }
 0x288   :  { %v696_v44 = vpop.f32.mrb[4].mxu1 }
 0x289   :  { %v703_v45 = vmax.f32 %v645_v40, %v696_v44  ;;  %v2009_v46 = vpop.f32.mrb[5].mxu1 }
 0x28a   :  { %v699_v47 = vpop.f32.mrb[6].mxu1 }
 0x28b   :  { %v704_v48 = vmax.f32 %v648_v42, %v699_v47  ;;  %v2010_v49 = vpop.f32.mrb[7].mxu1  ;;  %v729_v50 = vrot.slane %v703_v45, 7  ;;  %v950_v52 = vrot.slane %v703_v45, 1 }
 0x28d   :  { %v730_v53 = vrot.slane %v704_v48, 7  ;;  %v754_v54 = vpack.c.bf16 %v704_v48, %v703_v45  ;;  %v951_v55 = vrot.slane %v704_v48, 1 }
 0x28f   :  { %v731_v56 = vsel %vm211_vm0, %v729_v50, %v730_v53  ;;  %v732_v57 = vsel %vm211_vm0, %v730_v53, %v729_v50  ;;  %v2930_v58 = vsel %vm448_vm1, %v950_v52, %v951_v55  ;;  %v2934_v59 = vsel %vm448_vm1, %v951_v55, %v950_v52  ;;  %2028 = vmatmul.mubr.bf16.vlgmr.msra.gmra.mrb[8].mxu1 %v754_v54  ;;  %v2278_v50 = vld [vmem:[%s3144_s9] sm:$0xff]   ;;  %v2279_v53 = vld [vmem:[%s3144_s9 + $0x8] sm:$0xff]   ;;  %v2280_v54 = vld [vmem:[%s3144_s9 + $0x10] sm:$0xff]  }
 0x290   :  { %v1819_v60 = vpack.c.bf16 %v731_v56, %v732_v57  ;;  %v1848_v61 = vpack.c.bf16 %v2934_v59, %v2930_v58  ;;  %2032 = vmatpush3.bf16.msra.mxu1 %v2254_v51  ;;  %2047 = vmatprep.mubr.msk.bf16.mxu1 %vm2500_vm7, %v2499_v6  ;;  %v2281_v55 = vld [vmem:[%s3144_s9 + $0x18] sm:$0xff]   ;;  %v2282_v56 = vld [vmem:[%s3144_s9 + $0x40] sm:$0xff]   ;;  %v2283_v57 = vld [vmem:[%s3144_s9 + $0x48] sm:$0xff]  }
 0x291   :  { %2033 = vmatprep.subr.bf16.mxu1 %v2499_v6  ;;  %v2284_v58 = vld [vmem:[%s3144_s9 + $0x50] sm:$0xff]   ;;  %v2285_v59 = vld [vmem:[%s3144_s9 + $0x58] sm:$0xff]  }
 0x294   :  { %2034 = vmatpush3.bf16.msra.mxu1 %v2255_v62  ;;  %v2287_v62 = vld [vmem:[%s3146_s11 + $0x8] sm:$0xff]  }
 0x295   :  { %2035 = vmatprep.subr.bf16.mxu1 %v2499_v6 }
 0x298   :  { %2036 = vmatpush3.bf16.msra.mxu1 %v2256_v63  ;;  %v2288_v63 = vld [vmem:[%s3146_s11 + $0x10] sm:$0xff]  }
 0x299   :  { %2037 = vmatprep.subr.bf16.mxu1 %v2499_v6 }
 0x29c   :  { %2038 = vmatpush3.bf16.msra.mxu1 %v2257_v1  ;;  %v2289_v1 = vld [vmem:[%s3146_s11 + $0x18] sm:$0xff]  }
 0x29d   :  { %2039 = vmatprep.subr.bf16.mxu1 %v2499_v6 }
 0x2a0   :  { %2040 = vmatpush3.bf16.msra.mxu1 %v2258_v2  ;;  %v2290_v2 = vld [vmem:[%s3146_s11 + $0x20] sm:$0xff]  }
 0x2a1   :  { %2041 = vmatprep.subr.bf16.mxu1 %v2499_v6 }
 0x2a4   :  { %2042 = vmatpush3.bf16.msra.mxu1 %v2259_v3  ;;  %v2291_v3 = vld [vmem:[%s3146_s11 + $0x28] sm:$0xff]  }
 0x2a5   :  { %2043 = vmatprep.subr.bf16.mxu1 %v2499_v6 }
 0x2a8   :  { %2044 = vmatpush3.bf16.msra.mxu1 %v2260_v4  ;;  %v2292_v4 = vld [vmem:[%s3146_s11 + $0x30] sm:$0xff]  }
 0x2a9   :  { %2045 = vmatprep.subr.bf16.mxu1 %v2499_v6 }
 0x2ac   :  { %2046 = vmatpush3.bf16.msra.mxu1 %v2261_v9  ;;  %v2295_v9 = vld [vmem:[#allocation12 + $0x8] sm:$0xff]  }
 0x2ad   :  { %2051 = vmatprep.subr.bf16.mxu1 %v2499_v6 }
 0x2af   :  { %2048 = vmatmul.mubr.msk.bf16.vlgmr.msra.gmra.mrb[8].mxu1 %vm1818_vm11, %v1819_v60 }
 0x2b0   :  { %2052 = vmatpush3.bf16.msra.mxu1 %v2262_v10  ;;  %2067 = vmatprep.mubr.msk.bf16.mxu1 %vm2500_vm7, %v2499_v6  ;;  %v2296_v10 = vld [vmem:[#allocation12 + $0x10] sm:$0xff]  }
 0x2b1   :  { %2053 = vmatprep.subr.bf16.mxu1 %v2499_v6 }
 0x2b4   :  { %2054 = vmatpush3.bf16.msra.mxu1 %v2263_v5  ;;  %v2297_v5 = vld [vmem:[#allocation12 + $0x18] sm:$0xff]  }
 0x2b5   :  { %2055 = vmatprep.subr.bf16.mxu1 %v2499_v6 }
 0x2b8   :  { %2056 = vmatpush3.bf16.msra.mxu1 %v2264_v8  ;;  %v2298_v8 = vld [vmem:[#allocation12 + $0x20] sm:$0xff]  }
 0x2b9   :  { %2057 = vmatprep.subr.bf16.mxu1 %v2499_v6 }
 0x2bc   :  { %2058 = vmatpush3.bf16.msra.mxu1 %v2265_v11  ;;  %v2299_v11 = vld [vmem:[#allocation12 + $0x28] sm:$0xff]  }
 0x2bd   :  { %2059 = vmatprep.subr.bf16.mxu1 %v2499_v6 }
 0x2c0   :  { %2060 = vmatpush3.bf16.msra.mxu1 %v2266_v12 }
 0x2c1   :  { %2061 = vmatprep.subr.bf16.mxu1 %v2499_v6 }
 0x2c4   :  { %2062 = vmatpush3.bf16.msra.mxu1 %v2267_v13 }
 0x2c5   :  { %2063 = vmatprep.subr.bf16.mxu1 %v2499_v6 }
 0x2c8   :  { %2064 = vmatpush3.bf16.msra.mxu1 %v2268_v14 }
 0x2c9   :  { %2065 = vmatprep.subr.bf16.mxu1 %v2499_v6 }
 0x2cc   :  { %2066 = vmatpush3.bf16.msra.mxu1 %v2269_v15 }
 0x2cd   :  { %2119 = vmatprep.subr.bf16.mxu1 %v2499_v6 }
 0x2cf   :  { %2068 = vmatmul.mubr.msk.bf16.vlgmr.msra.gmra.mrb[8].mxu1 %vm1847_vm14, %v1848_v61  ;;  %v2286_v61 = vld [vmem:[%s3146_s11] sm:$0xff]  }
 0x2d0   :  { %2127 = vmatprep.mubr.msk.bf16.mxu1 %vm2500_vm7, %v2499_v6  ;;  %2120 = vmatpush3.bf16.msra.mxu1 %v2271_v20 }
 0x2d1   :  { %2121 = vmatprep.subr.bf16.mxu1 %v2499_v6 }
 0x2d4   :  { %2122 = vmatpush3.bf16.msra.mxu1 %v2273_v35  ;;  %v2300_v35 = vld [vmem:[#allocation12 + $0x30] sm:$0xff]  }
 0x2d5   :  { %2123 = vmatprep.subr.bf16.mxu1 %v2499_v6 }
 0x2d8   :  { %2124 = vmatpush3.bf16.msra.mxu1 %v2275_v37  ;;  %v1898_v37 = vld [vmem:[#allocation10] ss:$0 sm:$0xff] }
 0x2d9   :  { %2125 = vmatprep.subr.bf16.mxu1 %v2499_v6 }
 0x2dc   :  { %2126 = vmatpush3.bf16.msra.mxu1 %v2277_v39 }
 0x2dd   :  { %2151 = vmatprep.subr.bf16.mxu1 %v2499_v6 }
 0x3a2   :  { %v1058_v16 = vpop.f32.mrb[8].mxu1 }
 0x3a3   :  { %1069 = vrot.lane.b32.xlu0 %v1058_v16, %s2490_s30  ;;  %v2069_v17 = vpop.f32.mrb[9].mxu1 }
 0x3a4   :  { %v1061_v18 = vpop.f32.mrb[10].mxu1 }
 0x3a5   :  { %v2070_v19 = vpop.f32.mrb[11].mxu1 }
 0x3a7   :  { %1071 = vrot.lane.b32.xlu0 %v1061_v18, %s2490_s30 }
 0x415   :  { %v1070_v21 = vpop.permute.xlu0 %1069 }
 0x416   :  { %v1075_v22 = vmax.f32 %v1058_v16, %v1070_v21 }
 0x418   :  { %v1084_v25 = vadd.f32 %v1850_v23, %v1075_v22 }
 0x419   :  { %v1072_v24 = vpop.permute.xlu0 %1071 }
 0x41a   :  { %v1076_v26 = vmax.f32 %v1061_v18, %v1072_v24  ;;  %v1086_v28 = vmax.f32 %v1084_v25, 0.0 }
 0x41c   :  { %v1085_v27 = vadd.f32 %v1850_v23, %v1076_v26 }
 0x41e   :  { %v1087_v29 = vmax.f32 %v1085_v27, 0.0 }
 0x420   :  { %v1088_v30 = vpack.c.bf16 %v1087_v29, %v1086_v28  ;;  %v1897_v28 = vld [vmem:[#allocation9] ss:$0 sm:$0xff] }
 0x422   :  { %2072 = vmatpush3.bf16.msra.mxu0 %v1088_v30 }
 0x423   :  { %2077 = vmatprep.subr.bf16.mxu0 %v2499_v6 }
 0x425   :  { %2074 = vmatmul.mubr.msk.bf16.vlgmr.msra.gmra.mrb[8].mxu0 %vm1090_vm15, %v1089_v31 }
 0x426   :  { %2078 = vmatpush3.bf16.msra.mxu0 %v1088_v30  ;;  %2079 = vmatprep.mubr.msk.bf16.mxu0 %vm2500_vm7, %v2499_v6 }
 0x427   :  { %2083 = vmatprep.subr.bf16.mxu0 %v2499_v6 }
 0x42d   :  { %2080 = vmatmul.mubr.msk.bf16.vlgmr.msra.gmra.mrb[12].mxu0 %vm1090_vm15, %v1134_v32 }
 0x42e   :  { %2084 = vmatpush3.bf16.msra.mxu0 %v2270_v33  ;;  %2091 = vmatprep.mubr.msk.bf16.mxu0 %vm2500_vm7, %v2499_v6 }
 0x42f   :  { %2085 = vmatprep.subr.bf16.mxu0 %v2499_v6 }
 0x432   :  { %2086 = vmatpush3.bf16.msra.mxu0 %v2272_v34 }
 0x433   :  { %2087 = vmatprep.subr.bf16.mxu0 %v2499_v6 }
 0x436   :  { %2088 = vmatpush3.bf16.msra.mxu0 %v2274_v36  ;;  %v2301_v36 = vld [vmem:[#allocation12 + $0x38] sm:$0xff]  }
 0x437   :  { %2089 = vmatprep.subr.bf16.mxu0 %v2499_v6 }
 0x43a   :  { %2090 = vmatpush3.bf16.msra.mxu0 %v2276_v38 }
 0x43b   :  { %2095 = vmatprep.subr.bf16.mxu0 %v2499_v6 }
 0x4f8   :  { %v1128_v40 = vpop.f32.mrb[8].mxu0 }
 0x4f9   :  { %v2075_v41 = vpop.f32.mrb[9].mxu0 }
 0x4fa   :  { %v1131_v42 = vpop.f32.mrb[10].mxu0 }
 0x4fb   :  { %v2076_v43 = vpop.f32.mrb[11].mxu0 }
 0x500   :  { %v1172_v44 = vpop.f32.mrb[12].mxu0 }
 0x501   :  { %v1178_v45 = vmax.f32 %v1128_v40, %v1172_v44  ;;  %v2081_v46 = vpop.f32.mrb[13].mxu0 }
 0x502   :  { %v1175_v47 = vpop.f32.mrb[14].mxu0 }
 0x503   :  { %v1179_v48 = vpack.c.bf16 %v1178_v45, %v1178_v45  ;;  %v2082_v49 = vpop.f32.mrb[15].mxu0  ;;  %v1907_v45 = vld [vmem:[#allocation13] ss:$0 sm:$0xff] }
 0x505   :  { %v1198_v51 = vrot.slane %v1179_v48, 1  ;;  %v1420_v52 = vrot.slane %v1179_v48, 3  ;;  %v1342_v60 = vrot.slane %v1179_v48, 2 }
 0x507   :  { %2092 = vmatmul.mubr.msk.bf16.vlgmr.msra.gmra.mrb[16].mxu0 %vm285_vm6, %v1198_v51  ;;  %2128 = vmatmul.mubr.msk.bf16.vlgmr.msra.gmra.mrb[12].mxu1 %vm285_vm6, %v1420_v52 }
 0x508   :  { %2096 = vmatpush3.bf16.msra.mxu0 %v2278_v50  ;;  %2103 = vmatprep.mubr.msk.bf16.mxu0 %vm2500_vm7, %v2499_v6 }
 0x509   :  { %2097 = vmatprep.subr.bf16.mxu0 %v2499_v6  ;;  %2167 = vmatprep.mubr.msk.bf16.mxu1 %vm2500_vm7, %v2499_v6 }
 0x50a   :  { %2152 = vmatpush3.bf16.msra.mxu1 %v2294_v7 }
 0x50b   :  { %2153 = vmatprep.subr.bf16.mxu1 %v2499_v6 }
 0x50c   :  { %2098 = vmatpush3.bf16.msra.mxu0 %v2279_v53 }
 0x50d   :  { %2099 = vmatprep.subr.bf16.mxu0 %v2499_v6 }
 0x50e   :  { %2154 = vmatpush3.bf16.msra.mxu1 %v2295_v9 }
 0x50f   :  { %2155 = vmatprep.subr.bf16.mxu1 %v2499_v6 }
 0x510   :  { %2100 = vmatpush3.bf16.msra.mxu0 %v2280_v54 }
 0x511   :  { %2101 = vmatprep.subr.bf16.mxu0 %v2499_v6 }
 0x512   :  { %2156 = vmatpush3.bf16.msra.mxu1 %v2296_v10 }
 0x513   :  { %2157 = vmatprep.subr.bf16.mxu1 %v2499_v6 }
 0x514   :  { %2102 = vmatpush3.bf16.msra.mxu0 %v2281_v55 }
 0x515   :  { %2107 = vmatprep.subr.bf16.mxu0 %v2499_v6 }
 0x516   :  { %2158 = vmatpush3.bf16.msra.mxu1 %v2297_v5 }
 0x517   :  { %2104 = vmatmul.mubr.msk.bf16.vlgmr.msra.gmra.mrb[20].mxu0 %vm285_vm6, %v1179_v48  ;;  %2159 = vmatprep.subr.bf16.mxu1 %v2499_v6 }
 0x518   :  { %2108 = vmatpush3.bf16.msra.mxu0 %v2282_v56  ;;  %2115 = vmatprep.mubr.msk.bf16.mxu0 %vm2500_vm7, %v2499_v6 }
 0x519   :  { %2109 = vmatprep.subr.bf16.mxu0 %v2499_v6 }
 0x51a   :  { %2160 = vmatpush3.bf16.msra.mxu1 %v2298_v8 }
 0x51b   :  { %2161 = vmatprep.subr.bf16.mxu1 %v2499_v6 }
 0x51c   :  { %2110 = vmatpush3.bf16.msra.mxu0 %v2283_v57 }
 0x51d   :  { %2111 = vmatprep.subr.bf16.mxu0 %v2499_v6 }
 0x51e   :  { %2162 = vmatpush3.bf16.msra.mxu1 %v2299_v11 }
 0x51f   :  { %2163 = vmatprep.subr.bf16.mxu1 %v2499_v6 }
 0x520   :  { %2112 = vmatpush3.bf16.msra.mxu0 %v2284_v58 }
 0x521   :  { %2113 = vmatprep.subr.bf16.mxu0 %v2499_v6 }
 0x522   :  { %2164 = vmatpush3.bf16.msra.mxu1 %v2300_v35 }
 0x523   :  { %2165 = vmatprep.subr.bf16.mxu1 %v2499_v6 }
 0x524   :  { %2114 = vmatpush3.bf16.msra.mxu0 %v2285_v59 }
 0x525   :  { %2131 = vmatprep.subr.bf16.mxu0 %v2499_v6 }
 0x526   :  { %2166 = vmatpush3.bf16.msra.mxu1 %v2301_v36 }
 0x527   :  { %2116 = vmatmul.mubr.msk.bf16.vlgmr.msra.gmra.mrb[24].mxu0 %vm285_vm6, %v1342_v60 }
 0x528   :  { %2147 = vmatprep.mubr.msk.bf16.mxu0 %vm2500_vm7, %v2499_v6  ;;  %2132 = vmatpush3.bf16.msra.mxu0 %v2286_v61 }
 0x529   :  { %2133 = vmatprep.subr.bf16.mxu0 %v2499_v6 }
 0x52c   :  { %2134 = vmatpush3.bf16.msra.mxu0 %v2287_v62 }
 0x52d   :  { %2135 = vmatprep.subr.bf16.mxu0 %v2499_v6 }
 0x530   :  { %2136 = vmatpush3.bf16.msra.mxu0 %v2288_v63 }
 0x531   :  { %2137 = vmatprep.subr.bf16.mxu0 %v2499_v6 }
 0x534   :  { %2138 = vmatpush3.bf16.msra.mxu0 %v2289_v1 }
 0x535   :  { %2139 = vmatprep.subr.bf16.mxu0 %v2499_v6 }
 0x538   :  { %2140 = vmatpush3.bf16.msra.mxu0 %v2290_v2 }
 0x539   :  { %2141 = vmatprep.subr.bf16.mxu0 %v2499_v6 }
 0x53c   :  { %2142 = vmatpush3.bf16.msra.mxu0 %v2291_v3 }
 0x53d   :  { %2143 = vmatprep.subr.bf16.mxu0 %v2499_v6 }
 0x540   :  { %2144 = vmatpush3.bf16.msra.mxu0 %v2292_v4 }
 0x541   :  { %2145 = vmatprep.subr.bf16.mxu0 %v2499_v6 }
 0x544   :  { %2146 = vmatpush3.bf16.msra.mxu0 %v2293_v0 }
 0x5da   :  { %v1260_v12 = vpop.f32.mrb[16].mxu0  ;;  %v1482_v13 = vpop.f32.mrb[12].mxu1 }
 0x5db   :  { %v2093_v14 = vpop.f32.mrb[17].mxu0  ;;  %v2129_v15 = vpop.f32.mrb[13].mxu1 }
 0x5dc   :  { %v1263_v16 = vpop.f32.mrb[18].mxu0  ;;  %v1485_v17 = vpop.f32.mrb[14].mxu1 }
 0x5dd   :  { %v2094_v18 = vpop.f32.mrb[19].mxu0  ;;  %v2130_v19 = vpop.f32.mrb[15].mxu1 }
 0x5ea   :  { %v1327_v20 = vpop.f32.mrb[20].mxu0 }
 0x5eb   :  { %v1328_v21 = vadd.f32 %v1327_v20, %v1260_v12  ;;  %v2105_v22 = vpop.f32.mrb[21].mxu0 }
 0x5ec   :  { %v1330_v23 = vpop.f32.mrb[22].mxu0 }
 0x5ed   :  { %v2106_v24 = vpop.f32.mrb[23].mxu0 }
 0x5fa   :  { %v1404_v25 = vpop.f32.mrb[24].mxu0 }
 0x5fb   :  { %v1410_v26 = vadd.f32 %v1404_v25, %v1328_v21  ;;  %v2117_v27 = vpop.f32.mrb[25].mxu0 }
 0x5fc   :  { %v1407_v29 = vpop.f32.mrb[26].mxu0 }
 0x5fd   :  { %v1488_v30 = vadd.f32 %v1482_v13, %v1410_v26  ;;  %v2118_v31 = vpop.f32.mrb[27].mxu0 }
 0x5ff   :  { %v1496_v32 = vadd.f32 %v1897_v28, %v1488_v30 }
 0x601   :  { %v1497_v33 = vmax.f32 %v1496_v32, 0.0 }
 0x603   :  { %v1498_v34 = vpack.c.bf16 %v1497_v33, %v1497_v33 }
 0x605   :  { %2148 = vmatmul.mubr.bf16.vlgmr.msra.gmra.mrb[28].mxu0 %v1498_v34 }
 0x6d8   :  { %v1604_v38 = vpop.f32.mrb[28].mxu0 }
 0x6d9   :  { %v1605_v39 = vadd.f32 %v1898_v37, %v1604_v38  ;;  %v2149_v40 = vpop.f32.mrb[29].mxu0 }
 0x6da   :  { %v1607_v41 = vpop.f32.mrb[30].mxu0 }
 0x6db   :  { %v1610_v42 = vmax.f32 %v1605_v39, 0.0  ;;  %v2150_v43 = vpop.f32.mrb[31].mxu0 }
 0x6dd   :  { %v1611_v44 = vpack.c.bf16 %v1610_v42, %v1610_v42 }
 0x6df   :  { %2168 = vmatmul.mubr.bf16.vlgmr.msra.gmra.mrb[16].mxu1 %v1611_v44 }
 0x7b2   :  { %v1717_v46 = vpop.f32.mrb[16].mxu1 }
 0x7b3   :  { %v1718_v47 = vadd.f32 %v1907_v45, %v1717_v46  ;;  %v2169_v48 = vpop.f32.mrb[17].mxu1 }
 0x7b4   :  { %v1720_v49 = vpop.f32.mrb[18].mxu1 }
 0x7b5   :  { %1723 = vst [vmem:[%s3150_s15] sm:$0x3] %v1718_v47  ;;  %v2170_v6 = vpop.f32.mrb[19].mxu1 }
 0x7b6   :  { %1728 = vsyncpa [#allocation3], 1 }
 0x7b7   :  { %1729 = vsyncpa [#allocation5], 1 }
 0x7b8   :  { %1730 = vsyncpa [#allocation8], 1 }
 0x7b9   :  { %1731 = vsyncpa [#allocation11], 1 }
 0x7ba   :  { %1732 = vsyncpa [#allocation14], 1 }

</bundles_post_ra>
